<compile_context>
chip_gen: v7x
topology: tpu7x:2x2x1
jax: 0.10.0
libtpu: 0.0.40
codegen_flags: <defaults>
</compile_context>

<pallas_src>
import jax
import jax.numpy as jnp
from jax.experimental import pallas as pl
from jax.experimental.pallas import tpu as pltpu

_MXU_DTYPE = jnp.bfloat16   # MXU input dtype (f32 accumulation).  Elementwise stays f32.


# ----------------------------------------------------------------------------
# Fused kernel: upsample(x1) -> concat(x2, .) -> conv3x3+ReLU -> conv3x3+ReLU
# Flat layout everywhere: (rows = H [+2 zero pad rows], lanes = W*C).
# ----------------------------------------------------------------------------
def _up_fused_kernel(x1_ref, x2_ref, uh_ref, bw_ref,
                     m1_ref, b1_ref, m2_ref, b2_ref,
                     o_ref, s_in_ref, s_mid_ref):
    f32 = jnp.float32
    cdt = s_in_ref.dtype                  # MXU input dtype (bf16)
    h2 = s_in_ref.shape[0] - 2            # output spatial rows
    wc2 = x2_ref.shape[-1]                # skip lane width  (W2*C2)

    # --- bilinear x2 upsample of x1, both steps on the MXU --------------------------
    # Conv zero row-padding is folded into uh's zero border rows.
    t = jnp.dot(x1_ref[0], bw_ref[...], preferred_element_type=f32)        # (H1, W2*C1)
    up = jnp.dot(uh_ref[...], t.astype(cdt), preferred_element_type=f32)   # (H2+2, W2*C1)

    # --- build conv1 input slab: lanes = [skip x2 | upsampled x1] --------------------
    s_in_ref[:, wc2:] = up.astype(cdt)                      # border rows already zero
    s_in_ref[1:h2 + 1, :wc2] = x2_ref[0]
    s_in_ref[0:1, :wc2] = jnp.zeros((1, wc2), cdt)          # top zero-pad row
    s_in_ref[h2 + 1:h2 + 2, :wc2] = jnp.zeros((1, wc2), cdt)  # bottom zero-pad row

    # --- conv1 (3x3 SAME) + bias + ReLU: 3 block-Toeplitz matmuls, K = W2*(C1+C2) ----
    acc1 = jnp.zeros((h2, m1_ref.shape[2]), f32)
    for dy in range(3):                                     # static, fully unrolled
        acc1 += jnp.dot(s_in_ref[dy:dy + h2, :], m1_ref[dy],
                        preferred_element_type=f32)
    mid = jnp.maximum(acc1 + b1_ref[...], 0.0)              # f32 VPU epilogue

    wm = s_mid_ref.shape[1]
    s_mid_ref[1:h2 + 1, :] = mid.astype(cdt)
    s_mid_ref[0:1, :] = jnp.zeros((1, wm), cdt)
    s_mid_ref[h2 + 1:h2 + 2, :] = jnp.zeros((1, wm), cdt)

    # --- conv2 (3x3 SAME) + bias + ReLU ----------------------------------------------
    acc2 = jnp.zeros((h2, m2_ref.shape[2]), f32)
    for dy in range(3):
        acc2 += jnp.dot(s_mid_ref[dy:dy + h2, :], m2_ref[dy],
                        preferred_element_type=f32)
    o_ref[0] = jnp.maximum(acc2 + b2_ref[...], 0.0).astype(o_ref.dtype)    # lane-dense


# ----------------------------------------------------------------------------
# Wrapper-side matrix builders (weights/constants only; cheap, XLA side)
# ----------------------------------------------------------------------------
def _upsample_matrix(size):
    """(2*size, size) bilinear x2 matrix, PyTorch align_corners=False semantics."""
    out = 2 * size
    src = (jnp.arange(out, dtype=jnp.float32) + 0.5) / 2.0 - 0.5
    src = jnp.maximum(src, 0.0)                      # PyTorch clamps negatives
    i0 = jnp.clip(jnp.floor(src).astype(jnp.int32), 0, size - 1)
    i1 = jnp.clip(i0 + 1, 0, size - 1)
    t = src - i0.astype(jnp.float32)
    return ((1.0 - t)[:, None] * jax.nn.one_hot(i0, size, dtype=jnp.float32)
            + t[:, None] * jax.nn.one_hot(i1, size, dtype=jnp.float32))


def _conv_band_matrices(w_hwio, width):
    """(3, width*Cin, width*Cout) block-Toeplitz matrices, one per dy tap.

    M[dy, Jin*Cin+c, J*Cout+o] = w[dy, Jin-J+1, c, o] (0 outside the band), so
    sum_dy row_padded_flat[dy:dy+H] @ M[dy] == 3x3 SAME conv with zero padding.
    """
    cin, cout = w_hwio.shape[2], w_hwio.shape[3]
    jin = jnp.arange(width)[:, None]
    jout = jnp.arange(width)[None, :]
    dx = jin - jout + 1
    valid = ((dx >= 0) & (dx <= 2)).astype(w_hwio.dtype)
    wg = w_hwio[:, jnp.clip(dx, 0, 2)] * valid[None, :, :, None, None]  # (3,W,W,ci,co)
    return jnp.transpose(wg, (0, 1, 3, 2, 4)).reshape(3, width * cin, width * cout)


def _to_flat(x_nchw):
    n, c, h, w = x_nchw.shape
    return jnp.transpose(x_nchw, (0, 2, 3, 1)).reshape(n, h, w * c)


# ----------------------------------------------------------------------------
# Public forward: Up(x1, x2) with NCHW in / NCHW out (PyTorch layout)
# ----------------------------------------------------------------------------
@jax.jit
def up_forward(x1_nchw, x2_nchw, params):
    n, c1, h1, w1 = x1_nchw.shape
    n2, c2, h2, w2 = x2_nchw.shape
    assert n == n2 and h2 == 2 * h1 and (w2 - 2 * w1) in (0, 1)

    wt1, b1, wt2, b2 = params["w1"], params["b1"], params["w2"], params["b2"]
    cin = c1 + c2
    cmid, cout = wt1.shape[3], wt2.shape[3]
    assert wt1.shape[2] == cin and wt2.shape[2] == cmid

    cdt = _MXU_DTYPE
    x1_f = _to_flat(x1_nchw).astype(cdt)                                 # (N, H1, W1*C1)
    x2_f = _to_flat(x2_nchw).astype(cdt)                                 # (N, H2, W2*C2)

    # Upsample matrices (conv zero row-padding folded into uh's zero border rows;
    # the "x2 one column wider" case is handled by zero columns in bw).
    uh = jnp.pad(_upsample_matrix(h1), ((1, 1), (0, 0))).astype(cdt)     # (H2+2, H1)
    kw = jnp.kron(_upsample_matrix(w1).T, jnp.eye(c1, dtype=jnp.float32))
    bw = jnp.pad(kw, ((0, 0), (0, (w2 - 2 * w1) * c1))).astype(cdt)      # (W1*C1, W2*C1)

    # Block-Toeplitz conv matrices.  The channel concat([x2, up]) is folded into a
    # K-axis stack of the per-branch matrices: lanes [0, W2*C2) of the conv1 input
    # are the skip feature, lanes [W2*C2, W2*Cin) the upsampled one.
    m1s = _conv_band_matrices(wt1[:, :, :c2, :], w2)               # (3, W2*C2, W2*Cmid)
    m1u = _conv_band_matrices(wt1[:, :, c2:, :], w2)               # (3, W2*C1, W2*Cmid)
    m1 = jnp.concatenate([m1s, m1u], axis=1).astype(cdt)           # (3, W2*Cin, W2*Cmid)
    m2 = _conv_band_matrices(wt2, w2).astype(cdt)                  # (3, W2*Cmid, W2*Cout)
    b1r = jnp.tile(b1.astype(jnp.float32), w2)[None, :]            # (1, W2*Cmid)
    b2r = jnp.tile(b2.astype(jnp.float32), w2)[None, :]            # (1, W2*Cout)

    out_flat = pl.pallas_call(
        _up_fused_kernel,
        out_shape=jax.ShapeDtypeStruct((n, h2, w2 * cout), jnp.float32),
        grid=(n,),
        in_specs=[
            pl.BlockSpec((1, h1, w1 * c1), lambda i: (i, 0, 0)),
            pl.BlockSpec((1, h2, w2 * c2), lambda i: (i, 0, 0)),
            pl.BlockSpec((h2 + 2, h1), lambda i: (0, 0)),
            pl.BlockSpec((w1 * c1, w2 * c1), lambda i: (0, 0)),
            pl.BlockSpec((3, w2 * cin, w2 * cmid), lambda i: (0, 0, 0)),
            pl.BlockSpec((1, w2 * cmid), lambda i: (0, 0)),
            pl.BlockSpec((3, w2 * cmid, w2 * cout), lambda i: (0, 0, 0)),
            pl.BlockSpec((1, w2 * cout), lambda i: (0, 0)),
        ],
        out_specs=pl.BlockSpec((1, h2, w2 * cout), lambda i: (i, 0, 0)),
        scratch_shapes=[
            pltpu.VMEM((h2 + 2, w2 * cin), cdt),    # conv1 input: [skip | up], row padded
            pltpu.VMEM((h2 + 2, w2 * cmid), cdt),   # mid activation, row padded
        ],
        compiler_params=pltpu.CompilerParams(
            dimension_semantics=("parallel",),
            vmem_limit_bytes=32 * 1024 * 1024),
    )(x1_f, x2_f, uh, bw, m1, b1r, m2, b2r)

    return jnp.transpose(out_flat.reshape(n, h2, w2, cout), (0, 3, 1, 2))


def init_params(key, in_channels, out_channels):
    mid = in_channels // 2
    k1, k2, k3, k4 = jax.random.split(key, 4)
    return {
        "w1": jax.random.normal(k1, (3, 3, in_channels, mid), jnp.float32) * 0.1,
        "b1": jax.random.normal(k2, (mid,), jnp.float32) * 0.1,
        "w2": jax.random.normal(k3, (3, 3, mid, out_channels), jnp.float32) * 0.1,
        "b2": jax.random.normal(k4, (out_channels,), jnp.float32) * 0.1,
    }


# ----------------------------------------------------------------------------
# Pure-JAX f32 reference (PyTorch semantics) for the correctness check
# ----------------------------------------------------------------------------
def _bilinear_up_x2_nhwc_ref(x):
    _, H, W, _ = x.shape

    def coords(size):
        out = 2 * size
        src = (jnp.arange(out, dtype=jnp.float32) + 0.5) / 2.0 - 0.5
        src = jnp.maximum(src, 0.0)
        i0 = jnp.clip(jnp.floor(src).astype(jnp.int32), 0, size - 1)
        i1 = jnp.clip(i0 + 1, 0, size - 1)
        return i0, i1, src - i0.astype(jnp.float32)

    i0, i1, t = coords(H)
    t = t[None, :, None, None]
    x = x[:, i0] * (1.0 - t) + x[:, i1] * t
    j0, j1, s = coords(W)
    s = s[None, None, :, None]
    return x[:, :, j0] * (1.0 - s) + x[:, :, j1] * s


def _ref_forward(x1_nchw, x2_nchw, params):
    x1 = jnp.transpose(x1_nchw, (0, 2, 3, 1))
    x2 = jnp.transpose(x2_nchw, (0, 2, 3, 1))
    x1 = _bilinear_up_x2_nhwc_ref(x1)
    if x2.shape[2] - x1.shape[2] == 1:
        x1 = jnp.pad(x1, ((0, 0), (0, 0), (0, 1), (0, 0)))
    x = jnp.concatenate([x2, x1], axis=-1)

    def conv(x, w, b):
        y = jax.lax.conv_general_dilated(
            x, w, window_strides=(1, 1), padding="SAME",
            dimension_numbers=("NHWC", "HWIO", "NHWC"))
        return jnp.maximum(y + b[None, None, None, :], 0.0)

    x = conv(x, params["w1"], params["b1"])
    x = conv(x, params["w2"], params["b2"])
    return jnp.transpose(x, (0, 3, 1, 2))


if __name__ == "__main__":
    key = jax.random.PRNGKey(0)
    k1, k2, kp = jax.random.split(key, 3)

    N, C1, H1, W1 = 2, 4, 16, 16     # x1: decoder feature to be upsampled
    C2 = 4                           # x2: skip connection at 2x resolution
    Cout = 8
    Cin = C1 + C2                    # DoubleConv in_channels (after concat)

    x1 = jax.random.normal(k1, (N, C1, H1, W1), jnp.float32)
    x2 = jax.random.normal(k2, (N, C2, 2 * H1, 2 * W1), jnp.float32)
    params = init_params(kp, Cin, Cout)

    out = jax.block_until_ready(up_forward(x1, x2, params))
    assert out.shape == (N, Cout, 2 * H1, 2 * W1), out.shape

    ref = jax.block_until_ready(_ref_forward(x1, x2, params))
    # bf16 MXU inputs (f32 accumulation) vs. a pure-f32 reference -> loosened tolerance.
    max_err = float(jnp.max(jnp.abs(out - ref)))
    assert jnp.allclose(out, ref, atol=5e-2, rtol=5e-2), max_err

    print("KERNEL_OK")
</pallas_src>

<mosaic_0001>
module attributes {stable_mosaic.version = 11 : i64} {
  func.func @_up_fused_kernel(%arg0: i32, %arg1: memref<1x16x64xbf16, #tpu.memory_space<vmem>>, %arg2: memref<1x32x128xbf16, #tpu.memory_space<vmem>>, %arg3: memref<34x16xbf16, #tpu.memory_space<vmem>>, %arg4: memref<64x128xbf16, #tpu.memory_space<vmem>>, %arg5: memref<3x256x128xbf16, #tpu.memory_space<vmem>>, %arg6: memref<1x128xf32, #tpu.memory_space<vmem>>, %arg7: memref<3x128x256xbf16, #tpu.memory_space<vmem>>, %arg8: memref<1x256xf32, #tpu.memory_space<vmem>>, %arg9: memref<1x32x256xf32, #tpu.memory_space<vmem>>, %arg10: memref<34x256xbf16, #tpu.memory_space<vmem>>, %arg11: memref<34x128xbf16, #tpu.memory_space<vmem>>) attributes {dimension_semantics = [#tpu.dimension_semantics<parallel>], iteration_bounds = array<i64: 2>, scalar_prefetch = 0 : i64, scratch_operands = 2 : i64, tpu.core_type = #tpu.core_type<tc>, window_params = [{transform_indices = @transform_0, window_bounds = array<i64: 1, 16, 64>}, {transform_indices = @transform_1, window_bounds = array<i64: 1, 32, 128>}, {pipeline_mode = #tpu.pipeline_mode<synchronous>, transform_indices = @transform_2, window_bounds = array<i64: 34, 16>}, {pipeline_mode = #tpu.pipeline_mode<synchronous>, transform_indices = @transform_3, window_bounds = array<i64: 64, 128>}, {pipeline_mode = #tpu.pipeline_mode<synchronous>, transform_indices = @transform_4, window_bounds = array<i64: 3, 256, 128>}, {pipeline_mode = #tpu.pipeline_mode<synchronous>, transform_indices = @transform_5, window_bounds = array<i64: 1, 128>}, {pipeline_mode = #tpu.pipeline_mode<synchronous>, transform_indices = @transform_6, window_bounds = array<i64: 3, 128, 256>}, {pipeline_mode = #tpu.pipeline_mode<synchronous>, transform_indices = @transform_7, window_bounds = array<i64: 1, 256>}, {transform_indices = @transform_8, window_bounds = array<i64: 1, 32, 256>}]} {
    %c0 = arith.constant 0 : index
    %c0_0 = arith.constant 0 : index
    %c0_1 = arith.constant 0 : index
    %0 = vector.load %arg1[%c0, %c0_0, %c0_1] : memref<1x16x64xbf16, #tpu.memory_space<vmem>>, vector<1x16x64xbf16>
    %1 = vector.shape_cast %0 : vector<1x16x64xbf16> to vector<16x64xbf16>
    %c0_2 = arith.constant 0 : index
    %c0_3 = arith.constant 0 : index
    %2 = vector.load %arg4[%c0_2, %c0_3] : memref<64x128xbf16, #tpu.memory_space<vmem>>, vector<64x128xbf16>
    %cst = arith.constant dense<0.000000e+00> : vector<16x128xf32>
    %3 = tpu.matmul %1, %2, %cst {dimension_numbers = #tpu.dot_dimension_numbers<[1], [0], [0], [1], [0, 0, 1, 1], [], []>} : vector<16x64xbf16>, vector<64x128xbf16>, vector<16x128xf32> -> vector<16x128xf32>
    %c0_4 = arith.constant 0 : index
    %c0_5 = arith.constant 0 : index
    %4 = vector.load %arg3[%c0_4, %c0_5] : memref<34x16xbf16, #tpu.memory_space<vmem>>, vector<34x16xbf16>
    %5 = arith.truncf %3 : vector<16x128xf32> to vector<16x128xbf16>
    %cst_6 = arith.constant dense<0.000000e+00> : vector<34x128xf32>
    %6 = tpu.matmul %4, %5, %cst_6 {dimension_numbers = #tpu.dot_dimension_numbers<[1], [0], [0], [1], [0, 0, 1, 1], [], []>} : vector<34x16xbf16>, vector<16x128xbf16>, vector<34x128xf32> -> vector<34x128xf32>
    %7 = arith.truncf %6 : vector<34x128xf32> to vector<34x128xbf16>
    %c0_7 = arith.constant 0 : index
    %c128 = arith.constant 128 : index
    %8 = vector.load %arg10[%c0_7, %c128] : memref<34x256xbf16, #tpu.memory_space<vmem>>, vector<34x128xbf16>
    tpu.vector_store %arg10[%c0_7, %c128], %7 {strides = array<i32>} : memref<34x256xbf16, #tpu.memory_space<vmem>>, vector<34x128xbf16>,
    %c0_8 = arith.constant 0 : index
    %c0_9 = arith.constant 0 : index
    %c0_10 = arith.constant 0 : index
    %9 = vector.load %arg2[%c0_8, %c0_9, %c0_10] : memref<1x32x128xbf16, #tpu.memory_space<vmem>>, vector<1x32x128xbf16>
    %10 = vector.shape_cast %9 : vector<1x32x128xbf16> to vector<32x128xbf16>
    %c1 = arith.constant 1 : index
    %c0_11 = arith.constant 0 : index
    %11 = vector.load %arg10[%c1, %c0_11] : memref<34x256xbf16, #tpu.memory_space<vmem>>, vector<32x128xbf16>
    tpu.vector_store %arg10[%c1, %c0_11], %10 {strides = array<i32>} : memref<34x256xbf16, #tpu.memory_space<vmem>>, vector<32x128xbf16>,
    %cst_12 = arith.constant 0.000000e+00 : bf16
    %12 = vector.broadcast %cst_12 : bf16 to vector<1x128xbf16>
    %c0_13 = arith.constant 0 : index
    %c0_14 = arith.constant 0 : index
    %13 = vector.load %arg10[%c0_13, %c0_14] : memref<34x256xbf16, #tpu.memory_space<vmem>>, vector<1x128xbf16>
    tpu.vector_store %arg10[%c0_13, %c0_14], %12 {strides = array<i32>} : memref<34x256xbf16, #tpu.memory_space<vmem>>, vector<1x128xbf16>,
    %cst_15 = arith.constant 0.000000e+00 : bf16
    %14 = vector.broadcast %cst_15 : bf16 to vector<1x128xbf16>
    %c33 = arith.constant 33 : index
    %c0_16 = arith.constant 0 : index
    %15 = vector.load %arg10[%c33, %c0_16] : memref<34x256xbf16, #tpu.memory_space<vmem>>, vector<1x128xbf16>
    tpu.vector_store %arg10[%c33, %c0_16], %14 {strides = array<i32>} : memref<34x256xbf16, #tpu.memory_space<vmem>>, vector<1x128xbf16>,
    %cst_17 = arith.constant 0.000000e+00 : f32
    %16 = vector.broadcast %cst_17 : f32 to vector<32x128xf32>
    %c0_18 = arith.constant 0 : index
    %c0_19 = arith.constant 0 : index
    %17 = vector.load %arg10[%c0_18, %c0_19] : memref<34x256xbf16, #tpu.memory_space<vmem>>, vector<32x256xbf16>
    %c0_20 = arith.constant 0 : index
    %c0_21 = arith.constant 0 : index
    %c0_22 = arith.constant 0 : index
    %18 = vector.load %arg5[%c0_20, %c0_21, %c0_22] : memref<3x256x128xbf16, #tpu.memory_space<vmem>>, vector<1x256x128xbf16>
    %19 = vector.shape_cast %18 : vector<1x256x128xbf16> to vector<256x128xbf16>
    %cst_23 = arith.constant dense<0.000000e+00> : vector<32x128xf32>
    %20 = tpu.matmul %17, %19, %cst_23 {dimension_numbers = #tpu.dot_dimension_numbers<[1], [0], [0], [1], [0, 0, 1, 1], [], []>} : vector<32x256xbf16>, vector<256x128xbf16>, vector<32x128xf32> -> vector<32x128xf32>
    %21 = arith.addf %16, %20 : vector<32x128xf32>
    %c1_24 = arith.constant 1 : index
    %c0_25 = arith.constant 0 : index
    %22 = vector.load %arg10[%c1_24, %c0_25] : memref<34x256xbf16, #tpu.memory_space<vmem>>, vector<32x256xbf16>
    %c1_26 = arith.constant 1 : index
    %c0_27 = arith.constant 0 : index
    %c0_28 = arith.constant 0 : index
    %23 = vector.load %arg5[%c1_26, %c0_27, %c0_28] : memref<3x256x128xbf16, #tpu.memory_space<vmem>>, vector<1x256x128xbf16>
    %24 = vector.shape_cast %23 : vector<1x256x128xbf16> to vector<256x128xbf16>
    %cst_29 = arith.constant dense<0.000000e+00> : vector<32x128xf32>
    %25 = tpu.matmul %22, %24, %cst_29 {dimension_numbers = #tpu.dot_dimension_numbers<[1], [0], [0], [1], [0, 0, 1, 1], [], []>} : vector<32x256xbf16>, vector<256x128xbf16>, vector<32x128xf32> -> vector<32x128xf32>
    %26 = arith.addf %21, %25 : vector<32x128xf32>
    %c2 = arith.constant 2 : index
    %c0_30 = arith.constant 0 : index
    %27 = vector.load %arg10[%c2, %c0_30] : memref<34x256xbf16, #tpu.memory_space<vmem>>, vector<32x256xbf16>
    %c2_31 = arith.constant 2 : index
    %c0_32 = arith.constant 0 : index
    %c0_33 = arith.constant 0 : index
    %28 = vector.load %arg5[%c2_31, %c0_32, %c0_33] : memref<3x256x128xbf16, #tpu.memory_space<vmem>>, vector<1x256x128xbf16>
    %29 = vector.shape_cast %28 : vector<1x256x128xbf16> to vector<256x128xbf16>
    %cst_34 = arith.constant dense<0.000000e+00> : vector<32x128xf32>
    %30 = tpu.matmul %27, %29, %cst_34 {dimension_numbers = #tpu.dot_dimension_numbers<[1], [0], [0], [1], [0, 0, 1, 1], [], []>} : vector<32x256xbf16>, vector<256x128xbf16>, vector<32x128xf32> -> vector<32x128xf32>
    %31 = arith.addf %26, %30 : vector<32x128xf32>
    %c0_35 = arith.constant 0 : index
    %c0_36 = arith.constant 0 : index
    %32 = vector.load %arg6[%c0_35, %c0_36] : memref<1x128xf32, #tpu.memory_space<vmem>>, vector<1x128xf32>
    %33 = vector.broadcast %32 : vector<1x128xf32> to vector<32x128xf32>
    %34 = arith.addf %31, %33 : vector<32x128xf32>
    %cst_37 = arith.constant 0.000000e+00 : f32
    %35 = vector.broadcast %cst_37 : f32 to vector<32x128xf32>
    %36 = arith.maximumf %34, %35 : vector<32x128xf32>
    %37 = arith.truncf %36 : vector<32x128xf32> to vector<32x128xbf16>
    %c1_38 = arith.constant 1 : index
    %c0_39 = arith.constant 0 : index
    %38 = vector.load %arg11[%c1_38, %c0_39] : memref<34x128xbf16, #tpu.memory_space<vmem>>, vector<32x128xbf16>
    tpu.vector_store %arg11[%c1_38, %c0_39], %37 {strides = array<i32>} : memref<34x128xbf16, #tpu.memory_space<vmem>>, vector<32x128xbf16>,
    %cst_40 = arith.constant 0.000000e+00 : bf16
    %39 = vector.broadcast %cst_40 : bf16 to vector<1x128xbf16>
    %c0_41 = arith.constant 0 : index
    %c0_42 = arith.constant 0 : index
    %40 = vector.load %arg11[%c0_41, %c0_42] : memref<34x128xbf16, #tpu.memory_space<vmem>>, vector<1x128xbf16>
    tpu.vector_store %arg11[%c0_41, %c0_42], %39 {strides = array<i32>} : memref<34x128xbf16, #tpu.memory_space<vmem>>, vector<1x128xbf16>,
    %cst_43 = arith.constant 0.000000e+00 : bf16
    %41 = vector.broadcast %cst_43 : bf16 to vector<1x128xbf16>
    %c33_44 = arith.constant 33 : index
    %c0_45 = arith.constant 0 : index
    %42 = vector.load %arg11[%c33_44, %c0_45] : memref<34x128xbf16, #tpu.memory_space<vmem>>, vector<1x128xbf16>
    tpu.vector_store %arg11[%c33_44, %c0_45], %41 {strides = array<i32>} : memref<34x128xbf16, #tpu.memory_space<vmem>>, vector<1x128xbf16>,
    %cst_46 = arith.constant 0.000000e+00 : f32
    %43 = vector.broadcast %cst_46 : f32 to vector<32x256xf32>
    %c0_47 = arith.constant 0 : index
    %c0_48 = arith.constant 0 : index
    %44 = vector.load %arg11[%c0_47, %c0_48] : memref<34x128xbf16, #tpu.memory_space<vmem>>, vector<32x128xbf16>
    %c0_49 = arith.constant 0 : index
    %c0_50 = arith.constant 0 : index
    %c0_51 = arith.constant 0 : index
    %45 = vector.load %arg7[%c0_49, %c0_50, %c0_51] : memref<3x128x256xbf16, #tpu.memory_space<vmem>>, vector<1x128x256xbf16>
    %46 = vector.shape_cast %45 : vector<1x128x256xbf16> to vector<128x256xbf16>
    %cst_52 = arith.constant dense<0.000000e+00> : vector<32x256xf32>
    %47 = tpu.matmul %44, %46, %cst_52 {dimension_numbers = #tpu.dot_dimension_numbers<[1], [0], [0], [1], [0, 0, 1, 1], [], []>} : vector<32x128xbf16>, vector<128x256xbf16>, vector<32x256xf32> -> vector<32x256xf32>
    %48 = arith.addf %43, %47 : vector<32x256xf32>
    %c1_53 = arith.constant 1 : index
    %c0_54 = arith.constant 0 : index
    %49 = vector.load %arg11[%c1_53, %c0_54] : memref<34x128xbf16, #tpu.memory_space<vmem>>, vector<32x128xbf16>
    %c1_55 = arith.constant 1 : index
    %c0_56 = arith.constant 0 : index
    %c0_57 = arith.constant 0 : index
    %50 = vector.load %arg7[%c1_55, %c0_56, %c0_57] : memref<3x128x256xbf16, #tpu.memory_space<vmem>>, vector<1x128x256xbf16>
    %51 = vector.shape_cast %50 : vector<1x128x256xbf16> to vector<128x256xbf16>
    %cst_58 = arith.constant dense<0.000000e+00> : vector<32x256xf32>
    %52 = tpu.matmul %49, %51, %cst_58 {dimension_numbers = #tpu.dot_dimension_numbers<[1], [0], [0], [1], [0, 0, 1, 1], [], []>} : vector<32x128xbf16>, vector<128x256xbf16>, vector<32x256xf32> -> vector<32x256xf32>
    %53 = arith.addf %48, %52 : vector<32x256xf32>
    %c2_59 = arith.constant 2 : index
    %c0_60 = arith.constant 0 : index
    %54 = vector.load %arg11[%c2_59, %c0_60] : memref<34x128xbf16, #tpu.memory_space<vmem>>, vector<32x128xbf16>
    %c2_61 = arith.constant 2 : index
    %c0_62 = arith.constant 0 : index
    %c0_63 = arith.constant 0 : index
    %55 = vector.load %arg7[%c2_61, %c0_62, %c0_63] : memref<3x128x256xbf16, #tpu.memory_space<vmem>>, vector<1x128x256xbf16>
    %56 = vector.shape_cast %55 : vector<1x128x256xbf16> to vector<128x256xbf16>
    %cst_64 = arith.constant dense<0.000000e+00> : vector<32x256xf32>
    %57 = tpu.matmul %54, %56, %cst_64 {dimension_numbers = #tpu.dot_dimension_numbers<[1], [0], [0], [1], [0, 0, 1, 1], [], []>} : vector<32x128xbf16>, vector<128x256xbf16>, vector<32x256xf32> -> vector<32x256xf32>
    %58 = arith.addf %53, %57 : vector<32x256xf32>
    %c0_65 = arith.constant 0 : index
    %c0_66 = arith.constant 0 : index
    %59 = vector.load %arg8[%c0_65, %c0_66] : memref<1x256xf32, #tpu.memory_space<vmem>>, vector<1x256xf32>
    %60 = vector.broadcast %59 : vector<1x256xf32> to vector<32x256xf32>
    %61 = arith.addf %58, %60 : vector<32x256xf32>
    %cst_67 = arith.constant 0.000000e+00 : f32
    %62 = vector.broadcast %cst_67 : f32 to vector<32x256xf32>
    %63 = arith.maximumf %61, %62 : vector<32x256xf32>
    %c0_68 = arith.constant 0 : index
    %c0_69 = arith.constant 0 : index
    %c0_70 = arith.constant 0 : index
    %64 = vector.load %arg9[%c0_68, %c0_69, %c0_70] : memref<1x32x256xf32, #tpu.memory_space<vmem>>, vector<1x32x256xf32>
    %65 = vector.shape_cast %64 : vector<1x32x256xf32> to vector<32x256xf32>
    %66 = vector.shape_cast %63 : vector<32x256xf32> to vector<1x32x256xf32>
    tpu.vector_store %arg9[%c0_68, %c0_69, %c0_70], %66 {strides = array<i32>} : memref<1x32x256xf32, #tpu.memory_space<vmem>>, vector<1x32x256xf32>,
    return
  }
  func.func @transform_0(%arg0: i32) -> (i32, i32, i32) {
    %c0_i32 = arith.constant 0 : i32
    %c0_i32_0 = arith.constant 0 : i32
    %c0_i32_1 = arith.constant 0 : i32
    return %arg0, %c0_i32, %c0_i32_0 : i32, i32, i32
  }
  func.func @transform_1(%arg0: i32) -> (i32, i32, i32) {
    %c0_i32 = arith.constant 0 : i32
    %c0_i32_0 = arith.constant 0 : i32
    %c0_i32_1 = arith.constant 0 : i32
    return %arg0, %c0_i32, %c0_i32_0 : i32, i32, i32
  }
  func.func @transform_2(%arg0: i32) -> (i32, i32) {
    %c0_i32 = arith.constant 0 : i32
    %c0_i32_0 = arith.constant 0 : i32
    %c0_i32_1 = arith.constant 0 : i32
    return %c0_i32, %c0_i32_0 : i32, i32
  }
  func.func @transform_3(%arg0: i32) -> (i32, i32) {
    %c0_i32 = arith.constant 0 : i32
    %c0_i32_0 = arith.constant 0 : i32
    %c0_i32_1 = arith.constant 0 : i32
    return %c0_i32, %c0_i32_0 : i32, i32
  }
  func.func @transform_4(%arg0: i32) -> (i32, i32, i32) {
    %c0_i32 = arith.constant 0 : i32
    %c0_i32_0 = arith.constant 0 : i32
    %c0_i32_1 = arith.constant 0 : i32
    %c0_i32_2 = arith.constant 0 : i32
    return %c0_i32, %c0_i32_0, %c0_i32_1 : i32, i32, i32
  }
  func.func @transform_5(%arg0: i32) -> (i32, i32) {
    %c0_i32 = arith.constant 0 : i32
    %c0_i32_0 = arith.constant 0 : i32
    %c0_i32_1 = arith.constant 0 : i32
    return %c0_i32, %c0_i32_0 : i32, i32
  }
  func.func @transform_6(%arg0: i32) -> (i32, i32, i32) {
    %c0_i32 = arith.constant 0 : i32
    %c0_i32_0 = arith.constant 0 : i32
    %c0_i32_1 = arith.constant 0 : i32
    %c0_i32_2 = arith.constant 0 : i32
    return %c0_i32, %c0_i32_0, %c0_i32_1 : i32, i32, i32
  }
  func.func @transform_7(%arg0: i32) -> (i32, i32) {
    %c0_i32 = arith.constant 0 : i32
    %c0_i32_0 = arith.constant 0 : i32
    %c0_i32_1 = arith.constant 0 : i32
    return %c0_i32, %c0_i32_0 : i32, i32
  }
  func.func @transform_8(%arg0: i32) -> (i32, i32, i32) {
    %c0_i32 = arith.constant 0 : i32
    %c0_i32_0 = arith.constant 0 : i32
    %c0_i32_1 = arith.constant 0 : i32
    return %arg0, %c0_i32, %c0_i32_0 : i32, i32, i32
  }
}

</mosaic_0001>

<bundles_post_ra>
// kernel: tile.18
= control target key start
LH: loop header
LB: loop body
LE: loop exit
PB: predicated region body
PF: predicated region fallthrough
CT: control target
= control target key end

     0   :  { %s40_s0 = inlined_call_operand.vmem [shape: f32[8], index: 0, kind: input, shape index: {}]   ;;  %s41_s1 = inlined_call_operand.vmem [shape: f32[32,8], index: 1, kind: output, shape index: {}]  }
   0x1   :  { %v4_v0 = vld [vmem:[%s40_s0] ss:$0 sm:$0xff] }
   0x2   :  { %5 = vst [vmem:[%s41_s1] sm:$0xff] %v4_v0  ;;  %12 = vst [vmem:[%s41_s1 + $0x8] sm:$0xff] %v4_v0 }
   0x3   :  { %13 = vst [vmem:[%s41_s1 + $0x10] sm:$0xff] %v4_v0  ;;  %14 = vst [vmem:[%s41_s1 + $0x18] sm:$0xff] %v4_v0 }

// kernel: tile.19
= control target key start
LH: loop header
LB: loop body
LE: loop exit
PB: predicated region body
PF: predicated region fallthrough
CT: control target
= control target key end

     0   :  { %s7_s6 = smov 3  ;;  %s21_s9 = smov 3  ;;  %vm4_vm0 = vcmask 64512   ;;  %vm11_vm1 = vcmask 1048512   ;;  %vm18_vm2 = vcmask 982912   ;;  %vm25_vm3 = vcmask 917312   ;;  %s232_s0 = inlined_call_operand.vmem [shape: f32[32,8], index: 0, kind: input, shape index: {}]   ;;  %s233_s1 = inlined_call_operand.vmem [shape: f32[1,256], index: 1, kind: output, shape index: {}]  }
   0x1   :  { %v122_v0 = vld [vmem:[%s232_s0 + $0xf] ss:$16 sm:%s7_s6]   ;;  %s153_s10 = smov 120   ;;  %v124_v1 = vld [vmem:[%s232_s0 + $0xd] ss:$16 sm:%s21_s9]   ;;  %s14_s13 = smov 3 }
   0x2   :  { %9 = vrot.lane.b32.xlu0 %v122_v0, %s153_s10  ;;  %s154_s14 = smov 104   ;;  %v123_v2 = vld [vmem:[%s232_s0 + $0xe] ss:$16 sm:%s14_s13]   ;;  %s28_s17 = smov 3  ;;  %vm32_vm4 = vcmask 851712   ;;  %vm39_vm5 = vcmask 786112  }
   0x3   :  { %23 = vrot.lane.b32.xlu1 %v124_v1, %s154_s14  ;;  %v125_v3 = vld [vmem:[%s232_s0 + $0xc] ss:$16 sm:%s28_s17]   ;;  %s35_s20 = smov 3  ;;  %s42_s21 = smov 3  ;;  %vm46_vm6 = vcmask 720512   ;;  %vm53_vm7 = vcmask 654912  }
   0x4   :  { %s155_s22 = smov 112   ;;  %s156_s23 = smov 96   ;;  %v126_v4 = vld [vmem:[%s232_s0 + $0xb] ss:$16 sm:%s35_s20]   ;;  %v127_v5 = vld [vmem:[%s232_s0 + $0xa] ss:$16 sm:%s42_s21]  }
   0x5   :  { %s49_s28 = smov 3  ;;  %s56_s29 = smov 3  ;;  %vm60_vm8 = vcmask 589312   ;;  %vm67_vm9 = vcmask 523712   ;;  %vm74_vm10 = vcmask 458112   ;;  %vm81_vm11 = vcmask 392512  }
   0x6   :  { %16 = vrot.lane.b32.xlu0 %v123_v2, %s155_s22  ;;  %s157_s30 = smov 88   ;;  %s158_s2 = smov 80   ;;  %v128_v6 = vld [vmem:[%s232_s0 + $0x9] ss:$16 sm:%s49_s28]   ;;  %vm88_vm12 = vcmask 326912   ;;  %vm95_vm13 = vcmask 261312  }
   0x7   :  { %30 = vrot.lane.b32.xlu1 %v125_v3, %s156_s23  ;;  %v129_v7 = vld [vmem:[%s232_s0 + $0x8] ss:$16 sm:%s56_s29]   ;;  %s63_s7 = smov 3  ;;  %s70_s8 = smov 3  ;;  %vm102_vm14 = vcmask 195712   ;;  %vm109_vm15 = vcmask 130112  }
   0x8   :  { %s159_s9 = smov 72   ;;  %s160_s10 = smov 64   ;;  %v130_v8 = vld [vmem:[%s232_s0 + $0x7] ss:$16 sm:%s63_s7]   ;;  %v131_v9 = vld [vmem:[%s232_s0 + $0x6] ss:$16 sm:%s70_s8]  }
   0x9   :  { %s2_s13 = smov 3  ;;  %s77_s16 = smov 3 }
   0xa   :  { %37 = vrot.lane.b32.xlu0 %v126_v4, %s157_s30  ;;  %v3_v10 = vld [vmem:[%s232_s0] ss:$16 sm:%s2_s13]   ;;  %s84_s19 = smov 3  ;;  %s161_s20 = smov 56  }
   0xb   :  { %44 = vrot.lane.b32.xlu1 %v127_v5, %s158_s2  ;;  %5 = vst.msk [vmem:[#allocation0] ss:$8 sm:$0x3] %vm4_vm0, %v3_v10   ;;  %s162_s21 = smov 48   ;;  %v132_v11 = vld [vmem:[%s232_s0 + $0x5] ss:$16 sm:%s77_s16]  }
   0xc   :  { %v133_v12 = vld [vmem:[%s232_s0 + $0x4] ss:$16 sm:%s84_s19]   ;;  %s91_s26 = smov 3  ;;  %s98_s27 = smov 3 }
   0xd   :  { %s163_s28 = smov 40   ;;  %s164_s29 = smov 32   ;;  %v134_v13 = vld [vmem:[%s232_s0 + $0x3] ss:$16 sm:%s91_s26]   ;;  %v135_v14 = vld [vmem:[%s232_s0 + $0x2] ss:$16 sm:%s98_s27]  }
   0xe   :  { %51 = vrot.lane.b32.xlu0 %v128_v6, %s159_s9  ;;  %s105_s5 = smov 3  ;;  %s165_s6 = smov 24  }
   0xf   :  { %58 = vrot.lane.b32.xlu1 %v129_v7, %s160_s10  ;;  %s166_s7 = smov 16   ;;  %v136_v15 = vld [vmem:[%s232_s0 + $0x1] ss:$16 sm:%s105_s5]   ;;  %s167_s0 = smov 8  }
  0x12   :  { %65 = vrot.lane.b32.xlu0 %v130_v8, %s161_s20 }
  0x13   :  { %72 = vrot.lane.b32.xlu1 %v131_v9, %s162_s21 }
  0x16   :  { %79 = vrot.lane.b32.xlu0 %v132_v11, %s163_s28 }
  0x17   :  { %86 = vrot.lane.b32.xlu1 %v133_v12, %s164_s29 }
  0x1a   :  { %93 = vrot.lane.b32.xlu0 %v134_v13, %s165_s6 }
  0x1b   :  { %100 = vrot.lane.b32.xlu1 %v135_v14, %s166_s7 }
  0x1e   :  { %107 = vrot.lane.b32.xlu0 %v136_v15, %s167_s0 }
  0x74   :  { %v10_v16 = vpop.permute.xlu0 %9  }
  0x75   :  { %12 = vst.msk [vmem:[#allocation0] ss:$8 sm:$0x3] %vm11_vm1, %v10_v16   ;;  %v24_v17 = vpop.permute.xlu1 %23  }
  0x78   :  { %v17_v18 = vpop.permute.xlu0 %16  }
  0x79   :  { %19 = vst.msk [vmem:[#allocation0] ss:$8 sm:$0x3] %vm18_vm2, %v17_v18   ;;  %v31_v19 = vpop.permute.xlu1 %30  }
  0x7a   :  { %26 = vst.msk [vmem:[#allocation0] ss:$8 sm:$0x3] %vm25_vm3, %v24_v17  }
  0x7b   :  { %33 = vst.msk [vmem:[#allocation0] ss:$8 sm:$0x3] %vm32_vm4, %v31_v19  }
  0x7c   :  { %v38_v20 = vpop.permute.xlu0 %37  }
  0x7d   :  { %40 = vst.msk [vmem:[#allocation0] ss:$8 sm:$0x3] %vm39_vm5, %v38_v20   ;;  %v45_v21 = vpop.permute.xlu1 %44  }
  0x7e   :  { %47 = vst.msk [vmem:[#allocation0] ss:$8 sm:$0x3] %vm46_vm6, %v45_v21  }
  0x80   :  { %v52_v22 = vpop.permute.xlu0 %51  }
  0x81   :  { %54 = vst.msk [vmem:[#allocation0] ss:$8 sm:$0x3] %vm53_vm7, %v52_v22   ;;  %v59_v23 = vpop.permute.xlu1 %58  }
  0x82   :  { %61 = vst.msk [vmem:[#allocation0] ss:$8 sm:$0x3] %vm60_vm8, %v59_v23  }
  0x84   :  { %v66_v24 = vpop.permute.xlu0 %65  }
  0x85   :  { %68 = vst.msk [vmem:[#allocation0] ss:$8 sm:$0x3] %vm67_vm9, %v66_v24   ;;  %v73_v25 = vpop.permute.xlu1 %72  }
  0x86   :  { %75 = vst.msk [vmem:[#allocation0] ss:$8 sm:$0x3] %vm74_vm10, %v73_v25  }
  0x88   :  { %v80_v26 = vpop.permute.xlu0 %79  }
  0x89   :  { %82 = vst.msk [vmem:[#allocation0] ss:$8 sm:$0x3] %vm81_vm11, %v80_v26   ;;  %v87_v27 = vpop.permute.xlu1 %86  }
  0x8a   :  { %89 = vst.msk [vmem:[#allocation0] ss:$8 sm:$0x3] %vm88_vm12, %v87_v27  }
  0x8c   :  { %v94_v28 = vpop.permute.xlu0 %93  }
  0x8d   :  { %96 = vst.msk [vmem:[#allocation0] ss:$8 sm:$0x3] %vm95_vm13, %v94_v28   ;;  %v101_v29 = vpop.permute.xlu1 %100  }
  0x8e   :  { %103 = vst.msk [vmem:[#allocation0] ss:$8 sm:$0x3] %vm102_vm14, %v101_v29  }
  0x90   :  { %v108_v30 = vpop.permute.xlu0 %107  }
  0x91   :  { %110 = vst.msk [vmem:[#allocation0] ss:$8 sm:$0x3] %vm109_vm15, %v108_v30  }
  0x98   :  { %v114_v31 = vld [vmem:[#allocation0] sm:$0x1]  ;;  %v118_v32 = vld [vmem:[#allocation0 + $0x8] sm:$0x1] }
  0x99   :  { %116 = vst [vmem:[%s233_s1] sm:$0x1] %v114_v31  ;;  %137 = vst [vmem:[%s233_s1 + $0x1] sm:$0x1] %v118_v32 }

// kernel: tile.13
= control target key start
LH: loop header
LB: loop body
LE: loop exit
PB: predicated region body
PF: predicated region fallthrough
CT: control target
= control target key end

     0   :  { %s40_s0 = inlined_call_operand.vmem [shape: f32[4], index: 0, kind: input, shape index: {}]   ;;  %s41_s1 = inlined_call_operand.vmem [shape: f32[32,4], index: 1, kind: output, shape index: {}]  }
   0x1   :  { %v4_v0 = vld [vmem:[%s40_s0] ss:$0 sm:$0xff] }
   0x2   :  { %5 = vst [vmem:[%s41_s1] sm:$0xff] %v4_v0  ;;  %12 = vst [vmem:[%s41_s1 + $0x8] sm:$0xff] %v4_v0 }
   0x3   :  { %13 = vst [vmem:[%s41_s1 + $0x10] sm:$0xff] %v4_v0  ;;  %14 = vst [vmem:[%s41_s1 + $0x18] sm:$0xff] %v4_v0 }

// kernel: tile.14
= control target key start
LH: loop header
LB: loop body
LE: loop exit
PB: predicated region body
PF: predicated region fallthrough
CT: control target
= control target key end

     0   :  { %s259_s10 = smov 124   ;;  %s260_s11 = smov 116   ;;  %vm3_vm0 = vcmask 31744   ;;  %vm9_vm1 = vcmask 1048544   ;;  %vm15_vm2 = vcmask 1015744   ;;  %vm21_vm3 = vcmask 982944   ;;  %s399_s0 = inlined_call_operand.vmem [shape: f32[32,4], index: 0, kind: input, shape index: {}]   ;;  %s400_s1 = inlined_call_operand.vmem [shape: f32[1,128], index: 1, kind: output, shape index: {}]  }
   0x1   :  { %v197_v0 = vld [vmem:[%s399_s0 + $0x1f] sm:$0x1]   ;;  %v199_v1 = vld [vmem:[%s399_s0 + $0x1d] sm:$0x1]   ;;  %v198_v2 = vld [vmem:[%s399_s0 + $0x1e] sm:$0x1]  }
   0x2   :  { %7 = vrot.lane.b32.xlu0 %v197_v0, %s259_s10  ;;  %19 = vrot.lane.b32.xlu1 %v199_v1, %s260_s11  ;;  %v200_v3 = vld [vmem:[%s399_s0 + $0x1c] sm:$0x1]   ;;  %s261_s16 = smov 120   ;;  %s262_s17 = smov 112   ;;  %v201_v4 = vld [vmem:[%s399_s0 + $0x1b] sm:$0x1]  }
   0x3   :  { %v202_v5 = vld [vmem:[%s399_s0 + $0x1a] sm:$0x1]   ;;  %s263_s22 = smov 108   ;;  %s264_s23 = smov 104   ;;  %v203_v6 = vld [vmem:[%s399_s0 + $0x19] sm:$0x1]  }
   0x4   :  { %v204_v7 = vld [vmem:[%s399_s0 + $0x18] sm:$0x1]   ;;  %s265_s28 = smov 100   ;;  %s266_s29 = smov 96   ;;  %v205_v8 = vld [vmem:[%s399_s0 + $0x17] sm:$0x1]  }
   0x5   :  { %v206_v9 = vld [vmem:[%s399_s0 + $0x16] sm:$0x1]   ;;  %v2_v10 = vld [vmem:[%s399_s0] sm:$0x1]   ;;  %s267_s7 = smov 92   ;;  %s268_s8 = smov 88  }
   0x6   :  { %13 = vrot.lane.b32.xlu0 %v198_v2, %s261_s16  ;;  %25 = vrot.lane.b32.xlu1 %v200_v3, %s262_s17  ;;  %4 = vst.msk [vmem:[#allocation0] sm:$0x1] %vm3_vm0, %v2_v10   ;;  %v207_v11 = vld [vmem:[%s399_s0 + $0x15] sm:$0x1]   ;;  %v208_v12 = vld [vmem:[%s399_s0 + $0x14] sm:$0x1]  }
   0x7   :  { %s269_s13 = smov 84   ;;  %s270_s14 = smov 80   ;;  %v209_v13 = vld [vmem:[%s399_s0 + $0x13] sm:$0x1]   ;;  %v210_v14 = vld [vmem:[%s399_s0 + $0x12] sm:$0x1]  }
   0x8   :  { %s271_s19 = smov 76   ;;  %s272_s20 = smov 72   ;;  %v211_v15 = vld [vmem:[%s399_s0 + $0x11] sm:$0x1]   ;;  %v212_v16 = vld [vmem:[%s399_s0 + $0x10] sm:$0x1]  }
   0x9   :  { %s273_s25 = smov 68   ;;  %s274_s26 = smov 64   ;;  %v213_v17 = vld [vmem:[%s399_s0 + $0xf] sm:$0x1]   ;;  %v214_v18 = vld [vmem:[%s399_s0 + $0xe] sm:$0x1]  }
   0xa   :  { %31 = vrot.lane.b32.xlu0 %v201_v4, %s263_s22  ;;  %37 = vrot.lane.b32.xlu1 %v202_v5, %s264_s23  ;;  %s275_s2 = smov 60   ;;  %s276_s3 = smov 56   ;;  %v215_v19 = vld [vmem:[%s399_s0 + $0xd] sm:$0x1]   ;;  %v216_v20 = vld [vmem:[%s399_s0 + $0xc] sm:$0x1]  }
   0xb   :  { %s278_s9 = smov 48   ;;  %v217_v21 = vld [vmem:[%s399_s0 + $0xb] sm:$0x1]   ;;  %v218_v22 = vld [vmem:[%s399_s0 + $0xa] sm:$0x1]   ;;  %s280_s15 = smov 40  }
   0xc   :  { %v219_v23 = vld [vmem:[%s399_s0 + $0x9] sm:$0x1]   ;;  %v220_v24 = vld [vmem:[%s399_s0 + $0x8] sm:$0x1]   ;;  %s282_s21 = smov 32   ;;  %s284_s27 = smov 24  }
   0xd   :  { %v221_v25 = vld [vmem:[%s399_s0 + $0x7] sm:$0x1]   ;;  %v222_v26 = vld [vmem:[%s399_s0 + $0x6] sm:$0x1]   ;;  %v223_v27 = vld [vmem:[%s399_s0 + $0x5] sm:$0x1]  }
   0xe   :  { %43 = vrot.lane.b32.xlu0 %v203_v6, %s265_s28  ;;  %49 = vrot.lane.b32.xlu1 %v204_v7, %s266_s29  ;;  %v224_v28 = vld [vmem:[%s399_s0 + $0x4] sm:$0x1]   ;;  %s286_s4 = smov 16   ;;  %v225_v29 = vld [vmem:[%s399_s0 + $0x3] sm:$0x1]   ;;  %s288_s10 = smov 8  }
   0xf   :  { %v226_v30 = vld [vmem:[%s399_s0 + $0x2] sm:$0x1]   ;;  %v227_v31 = vld [vmem:[%s399_s0 + $0x1] sm:$0x1]   ;;  %s289_s0 = smov 4   ;;  %vm27_vm4 = vcmask 950144  }
  0x10   :  { %vm33_vm5 = vcmask 917344   ;;  %vm39_vm6 = vcmask 884544   ;;  %vm45_vm7 = vcmask 851744   ;;  %vm51_vm8 = vcmask 818944  }
  0x11   :  { %vm57_vm9 = vcmask 786144   ;;  %vm63_vm10 = vcmask 753344   ;;  %vm69_vm11 = vcmask 720544   ;;  %vm75_vm12 = vcmask 687744  }
  0x12   :  { %55 = vrot.lane.b32.xlu0 %v205_v8, %s267_s7  ;;  %61 = vrot.lane.b32.xlu1 %v206_v9, %s268_s8  ;;  %s277_s8 = smov 52   ;;  %vm81_vm13 = vcmask 654944   ;;  %vm87_vm14 = vcmask 622144   ;;  %vm93_vm15 = vcmask 589344   ;;  %vm99_vm0 = vcmask 556544  }
  0x16   :  { %67 = vrot.lane.b32.xlu0 %v207_v11, %s269_s13  ;;  %73 = vrot.lane.b32.xlu1 %v208_v12, %s270_s14  ;;  %s279_s14 = smov 44  }
  0x1a   :  { %79 = vrot.lane.b32.xlu0 %v209_v13, %s271_s19  ;;  %85 = vrot.lane.b32.xlu1 %v210_v14, %s272_s20  ;;  %s281_s20 = smov 36  }
  0x1e   :  { %91 = vrot.lane.b32.xlu0 %v211_v15, %s273_s25  ;;  %97 = vrot.lane.b32.xlu1 %v212_v16, %s274_s26  ;;  %s283_s26 = smov 28  }
  0x22   :  { %103 = vrot.lane.b32.xlu0 %v213_v17, %s275_s2  ;;  %109 = vrot.lane.b32.xlu1 %v214_v18, %s276_s3  ;;  %s285_s3 = smov 20  }
  0x26   :  { %115 = vrot.lane.b32.xlu0 %v215_v19, %s277_s8  ;;  %121 = vrot.lane.b32.xlu1 %v216_v20, %s278_s9  ;;  %s287_s9 = smov 12  }
  0x2a   :  { %127 = vrot.lane.b32.xlu0 %v217_v21, %s279_s14  ;;  %133 = vrot.lane.b32.xlu1 %v218_v22, %s280_s15 }
  0x2e   :  { %139 = vrot.lane.b32.xlu0 %v219_v23, %s281_s20  ;;  %145 = vrot.lane.b32.xlu1 %v220_v24, %s282_s21 }
  0x32   :  { %151 = vrot.lane.b32.xlu0 %v221_v25, %s283_s26  ;;  %157 = vrot.lane.b32.xlu1 %v222_v26, %s284_s27 }
  0x36   :  { %163 = vrot.lane.b32.xlu0 %v223_v27, %s285_s3  ;;  %169 = vrot.lane.b32.xlu1 %v224_v28, %s286_s4 }
  0x3a   :  { %175 = vrot.lane.b32.xlu0 %v225_v29, %s287_s9  ;;  %181 = vrot.lane.b32.xlu1 %v226_v30, %s288_s10 }
  0x3e   :  { %187 = vrot.lane.b32.xlu0 %v227_v31, %s289_s0 }
  0x74   :  { %v8_v32 = vpop.permute.xlu0 %7   ;;  %v20_v33 = vpop.permute.xlu1 %19  }
  0x75   :  { %10 = vst.msk [vmem:[#allocation0] sm:$0x1] %vm9_vm1, %v8_v32   ;;  %vm105_vm1 = vcmask 523744  }
  0x78   :  { %v14_v34 = vpop.permute.xlu0 %13   ;;  %v26_v35 = vpop.permute.xlu1 %25  }
  0x79   :  { %16 = vst.msk [vmem:[#allocation0] sm:$0x1] %vm15_vm2, %v14_v34   ;;  %vm111_vm2 = vcmask 490944  }
  0x7a   :  { %22 = vst.msk [vmem:[#allocation0] sm:$0x1] %vm21_vm3, %v20_v33   ;;  %vm117_vm3 = vcmask 458144  }
  0x7b   :  { %28 = vst.msk [vmem:[#allocation0] sm:$0x1] %vm27_vm4, %v26_v35   ;;  %vm123_vm4 = vcmask 425344  }
  0x7c   :  { %v32_v36 = vpop.permute.xlu0 %31   ;;  %v38_v37 = vpop.permute.xlu1 %37  }
  0x7d   :  { %34 = vst.msk [vmem:[#allocation0] sm:$0x1] %vm33_vm5, %v32_v36   ;;  %vm129_vm5 = vcmask 392544  }
  0x7e   :  { %40 = vst.msk [vmem:[#allocation0] sm:$0x1] %vm39_vm6, %v38_v37   ;;  %vm135_vm6 = vcmask 359744  }
  0x80   :  { %v44_v38 = vpop.permute.xlu0 %43   ;;  %v50_v39 = vpop.permute.xlu1 %49  }
  0x81   :  { %46 = vst.msk [vmem:[#allocation0] sm:$0x1] %vm45_vm7, %v44_v38   ;;  %vm141_vm7 = vcmask 326944  }
  0x82   :  { %52 = vst.msk [vmem:[#allocation0] sm:$0x1] %vm51_vm8, %v50_v39   ;;  %vm147_vm8 = vcmask 294144  }
  0x84   :  { %v56_v40 = vpop.permute.xlu0 %55   ;;  %v62_v41 = vpop.permute.xlu1 %61  }
  0x85   :  { %58 = vst.msk [vmem:[#allocation0] sm:$0x1] %vm57_vm9, %v56_v40   ;;  %vm153_vm9 = vcmask 261344  }
  0x86   :  { %64 = vst.msk [vmem:[#allocation0] sm:$0x1] %vm63_vm10, %v62_v41   ;;  %vm159_vm10 = vcmask 228544  }
  0x88   :  { %v68_v42 = vpop.permute.xlu0 %67   ;;  %v74_v43 = vpop.permute.xlu1 %73  }
  0x89   :  { %70 = vst.msk [vmem:[#allocation0] sm:$0x1] %vm69_vm11, %v68_v42   ;;  %vm165_vm11 = vcmask 195744  }
  0x8a   :  { %76 = vst.msk [vmem:[#allocation0] sm:$0x1] %vm75_vm12, %v74_v43   ;;  %vm171_vm12 = vcmask 162944  }
  0x8c   :  { %v80_v44 = vpop.permute.xlu0 %79   ;;  %v86_v45 = vpop.permute.xlu1 %85  }
  0x8d   :  { %82 = vst.msk [vmem:[#allocation0] sm:$0x1] %vm81_vm13, %v80_v44   ;;  %vm177_vm13 = vcmask 130144  }
  0x8e   :  { %88 = vst.msk [vmem:[#allocation0] sm:$0x1] %vm87_vm14, %v86_v45   ;;  %vm183_vm14 = vcmask 97344  }
  0x90   :  { %v92_v46 = vpop.permute.xlu0 %91   ;;  %v98_v47 = vpop.permute.xlu1 %97  }
  0x91   :  { %94 = vst.msk [vmem:[#allocation0] sm:$0x1] %vm93_vm15, %v92_v46   ;;  %vm189_vm15 = vcmask 64544  }
  0x92   :  { %100 = vst.msk [vmem:[#allocation0] sm:$0x1] %vm99_vm0, %v98_v47  }
  0x94   :  { %v104_v48 = vpop.permute.xlu0 %103   ;;  %v110_v49 = vpop.permute.xlu1 %109  }
  0x95   :  { %106 = vst.msk [vmem:[#allocation0] sm:$0x1] %vm105_vm1, %v104_v48  }
  0x96   :  { %112 = vst.msk [vmem:[#allocation0] sm:$0x1] %vm111_vm2, %v110_v49  }
  0x98   :  { %v116_v50 = vpop.permute.xlu0 %115   ;;  %v122_v51 = vpop.permute.xlu1 %121  }
  0x99   :  { %118 = vst.msk [vmem:[#allocation0] sm:$0x1] %vm117_vm3, %v116_v50  }
  0x9a   :  { %124 = vst.msk [vmem:[#allocation0] sm:$0x1] %vm123_vm4, %v122_v51  }
  0x9c   :  { %v128_v52 = vpop.permute.xlu0 %127   ;;  %v134_v53 = vpop.permute.xlu1 %133  }
  0x9d   :  { %130 = vst.msk [vmem:[#allocation0] sm:$0x1] %vm129_vm5, %v128_v52  }
  0x9e   :  { %136 = vst.msk [vmem:[#allocation0] sm:$0x1] %vm135_vm6, %v134_v53  }
  0xa0   :  { %v140_v54 = vpop.permute.xlu0 %139   ;;  %v146_v55 = vpop.permute.xlu1 %145  }
  0xa1   :  { %142 = vst.msk [vmem:[#allocation0] sm:$0x1] %vm141_vm7, %v140_v54  }
  0xa2   :  { %148 = vst.msk [vmem:[#allocation0] sm:$0x1] %vm147_vm8, %v146_v55  }
  0xa4   :  { %v152_v56 = vpop.permute.xlu0 %151   ;;  %v158_v57 = vpop.permute.xlu1 %157  }
  0xa5   :  { %154 = vst.msk [vmem:[#allocation0] sm:$0x1] %vm153_vm9, %v152_v56  }
  0xa6   :  { %160 = vst.msk [vmem:[#allocation0] sm:$0x1] %vm159_vm10, %v158_v57  }
  0xa8   :  { %v164_v58 = vpop.permute.xlu0 %163   ;;  %v170_v59 = vpop.permute.xlu1 %169  }
  0xa9   :  { %166 = vst.msk [vmem:[#allocation0] sm:$0x1] %vm165_vm11, %v164_v58  }
  0xaa   :  { %172 = vst.msk [vmem:[#allocation0] sm:$0x1] %vm171_vm12, %v170_v59  }
  0xac   :  { %v176_v60 = vpop.permute.xlu0 %175   ;;  %v182_v61 = vpop.permute.xlu1 %181  }
  0xad   :  { %178 = vst.msk [vmem:[#allocation0] sm:$0x1] %vm177_vm13, %v176_v60  }
  0xae   :  { %184 = vst.msk [vmem:[#allocation0] sm:$0x1] %vm183_vm14, %v182_v61  }
  0xb0   :  { %v188_v62 = vpop.permute.xlu0 %187  }
  0xb1   :  { %190 = vst.msk [vmem:[#allocation0] sm:$0x1] %vm189_vm15, %v188_v62  }
  0xb8   :  { %v194_v63 = vld [vmem:[#allocation0] sm:$0x1] }
  0xb9   :  { %196 = vst [vmem:[%s400_s1] sm:$0x1] %v194_v63 }

// kernel: up_forward.1
= control target key start
LH: loop header
LB: loop body
LE: loop exit
PB: predicated region body
PF: predicated region fallthrough
CT: control target
= control target key end

     0   :  { %s2512_s27 = smov 0   ;;  %s2985_s0 = inlined_call_operand.vmem [shape: bf16[2,16,64], index: 0, kind: input, shape index: {}]   ;;  %s2986_s1 = inlined_call_operand.vmem [shape: bf16[2,32,128], index: 1, kind: input, shape index: {}]   ;;  %s2987_s2 = inlined_call_operand.vmem [shape: bf16[34,16], index: 2, kind: input, shape index: {}]   ;;  %s2988_s3 = inlined_call_operand.vmem [shape: bf16[64,128], index: 3, kind: input, shape index: {}]   ;;  %s2989_s4 = inlined_call_operand.vmem [shape: bf16[3,256,128], index: 4, kind: input, shape index: {}]   ;;  %s2990_s5 = inlined_call_operand.vmem [shape: f32[1,128], index: 5, kind: input, shape index: {}]   ;;  %s2991_s6 = inlined_call_operand.vmem [shape: bf16[3,128,256], index: 6, kind: input, shape index: {}]   ;;  %s2992_s7 = inlined_call_operand.vmem [shape: f32[1,256], index: 7, kind: input, shape index: {}]   ;;  %s2993_s8 = inlined_call_operand.vmem [shape: f32[2,32,256], index: 8, kind: output, shape index: {}]  }
   0x1 LB: > { %s1918_s28 = sadd.s32 4294967295, %s2462_s27   ;;  %p1922_p0 = scmp.ge.s32.totalorder %s2462_s27, 1  ;;  %s2462_s27 = sphi %s2512_s27, %s18_s27  }
   0x2   : > { %p272_p1 = scmp.lt.s32.totalorder %s2462_s27, 3 }
   0x4   : > { %p273_p2 = pnand %p1922_p0, %p272_p1 }
   0x5   : > { %v2315_v0 = vld [vmem:[%s2988_s3] sm:$0xff] (!%p273_p2)   ;;  %v2464_v1 = vmov (!%p273_p2), 0.0   ;;  %v2316_v2 = vld [vmem:[%s2988_s3 + $0x8] sm:$0xff] (!%p273_p2)   ;;  %vm2465_vm0 = vmmov (!%p273_p2), 0   ;;  %p311_p3 = scmp.lt.s32.totalorder (!%p273_p2), %s1918_s28, 1  ;;  %v2317_v3 = vld [vmem:[%s2988_s3 + $0x10] sm:$0xff] (!%p273_p2)  }
   0x6   : > { %276 = sbr.rel (%p273_p2) target bundleno = 1091 (0x443), region = 52  ;;  %2262 = vmatprep.subr.bf16.mxu0 (!%p273_p2), %v2464_v1  ;;  %2274 = vmatprep.subr.bf16.mxu1 (!%p273_p2), %v2464_v1  ;;  %vm526_vm1 = vsmask.f32 (!%p273_p2), 256  ;;  %vm366_vm2 = vcmask (!%p273_p2), 523264   ;;  %vm527_vm3 = vsmask.f32 (!%p273_p2), 4368 }
   0x7   : > { %2263 = vmatpush3.bf16.msra.mxu0 (!%p273_p2), %v2315_v0  ;;  %2270 = vmatprep.mubr.msk.bf16.mxu0 (!%p273_p2), %vm2465_vm0, %v2464_v1  ;;  %vm570_vm4 = vsmask.f32 (!%p273_p2), 7938  ;;  %v2318_v4 = vld [vmem:[%s2988_s3 + $0x18] sm:$0xff] (!%p273_p2)   ;;  %vm569_vm5 = vcmask (!%p273_p2), 1043456   ;;  %vm578_vm6 = vcmask (!%p273_p2), 1040384   ;;  %vm2553_vm7 = vmor (!%p273_p2), %vm526_vm1, %vm527_vm3  ;;  %v2323_v48 = vld [vmem:[%s2989_s4 + $0xc0] sm:$0xff] (!%p273_p2)  }
   0x8   : > { %2264 = vmatprep.subr.bf16.mxu0 (!%p273_p2), %v2464_v1  ;;  %2276 = vmatprep.mubr.msk.bf16.mxu1 (!%p273_p2), %vm2465_vm0, %v2464_v1  ;;  %v572_v18 = vld [vmem:[#allocation2] sm:$0xf] (!%p273_p2)  ;;  %vm2559_vm8 = vmand (!%p273_p2), %vm569_vm5, %vm570_vm4  ;;  %vm430_vm11 = vcmask (!%p273_p2), 130048   ;;  %v2321_v53 = vld [vmem:[%s2987_s2 + $0x8] sm:$0xff] (!%p273_p2)   ;;  %vm1059_vm12 = vcmask (!%p273_p2), 1046528  }
   0x9   : > { %v580_v22 = vld [vmem:[#allocation2 + $0x20] sm:$0x1] (!%p273_p2)  ;;  %vm2565_vm9 = vmand (!%p273_p2), %vm578_vm6, %vm526_vm1  ;;  %v2322_v54 = vld [vmem:[%s2987_s2 + $0x10] ss:$0 sps:$4 sm:$0x11] (!%p273_p2)  }
   0xa   : > { %vm2571_vm10 = vmand (!%p273_p2), %vm578_vm6, %vm570_vm4  ;;  %v2320_v51 = vld [vmem:[%s2987_s2] sm:$0xff] (!%p273_p2)   ;;  %v2325_v55 = vld [vmem:[%s2989_s4 + $0xc8] sm:$0xff] (!%p273_p2)   ;;  %vm681_vm13 = vsmask.f32 (!%p273_p2), 7424 }
   0xb   : > { %2265 = vmatpush3.bf16.msra.mxu0 (!%p273_p2), %v2316_v2  ;;  %v2324_v52 = vld [vmem:[%s2989_s4 + $0x80] sm:$0xff] (!%p273_p2)   ;;  %v2326_v56 = vld [vmem:[%s2989_s4 + $0x88] sm:$0xff] (!%p273_p2)   ;;  %v2327_v57 = vld [vmem:[%s2989_s4 + $0xd0] sm:$0xff] (!%p273_p2)  }
   0xc   : > { %2266 = vmatprep.subr.bf16.mxu0 (!%p273_p2), %v2464_v1  ;;  %v2328_v58 = vld [vmem:[%s2989_s4 + $0x90] sm:$0xff] (!%p273_p2)   ;;  %v2329_v59 = vld [vmem:[%s2989_s4 + $0xd8] sm:$0xff] (!%p273_p2)   ;;  %v2331_v61 = vld [vmem:[%s2989_s4 + $0xe0] sm:$0xff] (!%p273_p2)  }
   0xd   : > { %s3003_s28 = smov (!%p311_p3, %s1918_s28), 1  ;;  %v2330_v60 = vld [vmem:[%s2989_s4 + $0x98] sm:$0xff]   ;;  %v2332_v62 = vld [vmem:[%s2989_s4 + $0xa0] sm:$0xff]   ;;  %v2333_v63 = vld [vmem:[%s2989_s4 + $0xe8] sm:$0xff]  }
   0xe   : > { %s2157_s13 = sshll.u32 %s3003_s28, 3  ;;  %s2158_s14 = sshll.u32 %s3003_s28, 4  ;;  %v2334_v0 = vld [vmem:[%s2989_s4 + $0xa8] sm:$0xff]   ;;  %v2336_v2 = vld [vmem:[%s2989_s4 + $0xb0] sm:$0xff]  }
   0xf   : > { %s315_s17 = scalar_lea.vmem %s2985_s0, %s2157_s13  ;;  %s320_s20 = scalar_lea.vmem %s2986_s1, %s2158_s14  ;;  %2267 = vmatpush3.bf16.msra.mxu0 %v2317_v3  ;;  %v2337_v3 = vld [vmem:[%s2989_s4 + $0xf8] sm:$0xff]  }
  0x10   : > { %v522_v5 = vld [vmem:[%s320_s20] sm:$0xf]  ;;  %v523_v6 = vld [vmem:[%s320_s20 + $0x4] sm:$0xf]  ;;  %v524_v7 = vld [vmem:[%s320_s20 + $0x8] sm:$0xf]  ;;  %2268 = vmatprep.subr.bf16.mxu0 %v2464_v1 }
  0x11   : > { %v525_v8 = vld [vmem:[%s320_s20 + $0xc] sm:$0xf]  ;;  %v530_v9 = vshrl.u32 %v522_v5, 16  ;;  %v533_v10 = vshll.u32 %v522_v5, 16  ;;  %v538_v11 = vshrl.u32 %v523_v6, 16  ;;  %v541_v12 = vshll.u32 %v523_v6, 16 }
  0x12   : > { %v2319_v13 = vld [vmem:[%s315_s17] sm:$0xff]   ;;  %v547_v14 = vshrl.u32 %v524_v7, 16  ;;  %v550_v15 = vshll.u32 %v524_v7, 16  ;;  %v556_v16 = vshrl.u32 %v525_v8, 16  ;;  %v559_v17 = vshll.u32 %v525_v8, 16  ;;  %s2159_s25 = sshll.u32 %s3003_s28, 6 }
  0x13   : > { %v532_v20 = vrot.slane %v530_v9, 7  ;;  %v540_v21 = vrot.slane %v538_v11, 7  ;;  %2269 = vmatpush3.bf16.msra.mxu0 %v2318_v4  ;;  %v2338_v4 = vld [vmem:[%s2989_s4 + $0xb8] sm:$0xff]   ;;  %v2344_v5 = vld [vmem:[%s2989_s4 + $0x40] sm:$0xff]   ;;  %s325_s30 = scalar_lea.vmem %s2993_s8, %s2159_s25 }
  0x14   : > { %v549_v23 = vrot.slane %v547_v14, 7  ;;  %v558_v24 = vrot.slane %v556_v16, 7  ;;  %v2411_v35 = vld [vmem:[%s2991_s6 + $0x14] ss:$8 sps:$4 sm:$0xff]  }
  0x15   : > { %v535_v26 = vor.u32 %v533_v10, %v532_v20  ;;  %v536_v27 = vrot.slane %v532_v20, 4  ;;  %v543_v28 = vor.u32 %v541_v12, %v540_v21  ;;  %v545_v29 = vrot.slane %v540_v21, 4 }
  0x16   : > { %v552_v31 = vor.u32 %v550_v15, %v549_v23  ;;  %v554_v32 = vrot.slane %v549_v23, 4  ;;  %v561_v33 = vor.u32 %v559_v17, %v558_v24  ;;  %v563_v34 = vrot.slane %v558_v24, 4  ;;  %2271 = vmatmul.mubr.msk.bf16.vlgmr.msra.gmra.mrb[0].mxu0 %vm366_vm2, %v2319_v13 }
  0x17   : > { %v544_v36 = vsel %vm2553_vm7, %v536_v27, %v543_v28  ;;  %v573_v37 = vsel %vm2559_vm8, %v535_v26, %v572_v18 }
  0x18   : > { %v553_v38 = vsel %vm2553_vm7, %v545_v29, %v552_v31  ;;  %v562_v39 = vsel %vm2553_vm7, %v554_v32, %v561_v33  ;;  %574 = vst [vmem:[#allocation2] sm:$0xf] %v573_v37  ;;  %575 = vst [vmem:[#allocation2 + $0x8] sm:$0xf] %v544_v36  ;;  %v581_v40 = vsel %vm2565_vm9, %v563_v34, %v580_v22 }
  0x19   : > { %576 = vst [vmem:[#allocation2 + $0x10] sm:$0xf] %v553_v38  ;;  %577 = vst [vmem:[#allocation2 + $0x18] sm:$0xf] %v562_v39 }
  0x1a   : > { %582 = vst [vmem:[#allocation2 + $0x20] sm:$0x1] %v581_v40 }
  0x1f   : > { %v583_v41 = vld [vmem:[#allocation2] sm:$0x1] }
  0x20   : > { %v584_v42 = vsel %vm2565_vm9, 0, %v583_v41  ;;  %v2665_v36 = vld [vmem:[#allocation2 + $0x10] ss:$8 sps:$4 sm:$0xff]  }
  0x21   : > { %v587_v43 = vld [vmem:[#allocation2 + $0x20] sm:$0x1]  ;;  %585 = vst [vmem:[#allocation2] sm:$0x1] %v584_v42  ;;  %v690_v42 = vshll.u32 %v2665_v36, 16 }
  0x22   : > { %v588_v44 = vsel %vm2571_vm10, 0, %v587_v43 }
  0x23   : > { %589 = vst [vmem:[#allocation2 + $0x20] sm:$0x1] %v588_v44  ;;  %v1061_v44 = vrot.slane %v2665_v36, 1 }
  0xe9   : > { %v404_v45 = vpop.f32.mrb[0].mxu0 }
  0xea   : > { %v2272_v46 = vpop.f32.mrb[1].mxu0 }
  0xeb   : > { %v407_v47 = vpop.f32.mrb[2].mxu0 }
  0xec   : > { %v416_v49 = vpack.c.bf16 %v407_v47, %v404_v45  ;;  %v2273_v50 = vpop.f32.mrb[3].mxu0 }
  0xee   : > { %2275 = vmatpush3.bf16.msra.mxu1 %v416_v49  ;;  %v2345_v49 = vld [vmem:[%s2989_s4] sm:$0xff]  }
  0xef   : > { %2178 = vmatprep.subr.bf16.mxu1 %v2323_v48  ;;  %v692_v48 = vrot.slane %v690_v42, 1 }
  0xf1   : > { %2277 = vmatmul.mubr.msk.bf16.vlgmr.msra.gmra.mrb[0].mxu1 %vm430_vm11, %v2320_v51 }
  0xf2   : > { %2280 = vmatprep.mubr.msk.bf16.mxu1 %vm2465_vm0, %v2464_v1  ;;  %2179 = vmatpush3.bf16.msra.mxu1 %v2324_v52 }
  0xf3   : > { %2180 = vmatprep.subr.bf16.mxu1 %v2325_v55 }
  0xf6   : > { %2181 = vmatpush3.bf16.msra.mxu1 %v2326_v56 }
  0xf7   : > { %2182 = vmatprep.subr.bf16.mxu1 %v2327_v57  ;;  %v2347_v57 = vld [vmem:[%s2989_s4 + $0x8] sm:$0xff]  }
  0xf9   : > { %2281 = vmatmul.mubr.msk.bf16.gmra.mrb[4].mxu1 %vm430_vm11, %v2321_v53  ;;  %v2346_v53 = vld [vmem:[%s2989_s4 + $0x48] sm:$0xff]  }
  0xfa   : > { %2284 = vmatprep.mubr.msk.bf16.mxu1 %vm2465_vm0, %v2464_v1  ;;  %2183 = vmatpush3.bf16.msra.mxu1 %v2328_v58  ;;  %v2335_v1 = vld [vmem:[%s2989_s4 + $0xf0] sm:$0xff]  }
  0xfb   : > { %2184 = vmatprep.subr.bf16.mxu1 %v2329_v59 }
  0xfe   : > { %2185 = vmatpush3.bf16.msra.mxu1 %v2330_v60 }
  0xff   : > { %2186 = vmatprep.subr.bf16.mxu1 %v2331_v61 }
 0x101   : > { %2285 = vmatmul.mubr.msk.bf16.gmra.mrb[8].mxu1 %vm430_vm11, %v2322_v54 }
 0x102   : > { %2187 = vmatpush3.bf16.msra.mxu1 %v2332_v62  ;;  %v2349_v62 = vld [vmem:[%s2989_s4 + $0x50] sm:$0xff]  }
 0x103   : > { %2188 = vmatprep.subr.bf16.mxu1 %v2333_v63  ;;  %v706_v63 = vshrl.u32 %v2665_v36, 16 }
 0x106   : > { %2189 = vmatpush3.bf16.msra.mxu1 %v2334_v0 }
 0x107   : > { %2190 = vmatprep.subr.bf16.mxu1 %v2335_v1 }
 0x10a   : > { %2191 = vmatpush3.bf16.msra.mxu1 %v2336_v2 }
 0x10b   : > { %2192 = vmatprep.subr.bf16.mxu1 %v2337_v3 }
 0x10e   : > { %2193 = vmatpush3.bf16.msra.mxu1 %v2338_v4 }
 0x10f   : > { %2206 = vmatprep.subr.bf16.mxu1 %v2344_v5  ;;  %v708_v5 = vor.u32 %v706_v63, %v692_v48 }
 0x1c4   : > { %v474_v6 = vpop.f32.mrb[0].mxu1 }
 0x1c5   : > { %v2160_v7 = vpack.c.bf16 %v474_v6, %v474_v6  ;;  %v2278_v8 = vpop.f32.mrb[1].mxu1  ;;  %v2351_v6 = vld [vmem:[%s2989_s4 + $0x10] sm:$0xff]  }
 0x1c6   : > { %v477_v9 = vpop.f32.mrb[2].mxu1 }
 0x1c7   : > { %517 = vst [vmem:[#allocation2 + $0x4] sm:$0xf] %v2160_v7  ;;  %v2161_v10 = vpack.c.bf16 %v477_v9, %v477_v9  ;;  %v2279_v11 = vpop.f32.mrb[3].mxu1  ;;  %v2352_v7 = vld [vmem:[%s2989_s4 + $0x58] sm:$0xff]  }
 0x1c8   : > { %v2353_v9 = vld [vmem:[%s2989_s4 + $0x18] sm:$0xff]   ;;  %v2355_v11 = vld [vmem:[%s2989_s4 + $0x20] sm:$0xff]  }
 0x1c9   : > { %518 = vst [vmem:[#allocation2 + $0xc] sm:$0xf] %v2161_v10  ;;  %v2354_v10 = vld [vmem:[%s2989_s4 + $0x60] sm:$0xff]  }
 0x1cc   : > { %v482_v12 = vpop.f32.mrb[4].mxu1 }
 0x1cd   : > { %v2162_v13 = vpack.c.bf16 %v482_v12, %v482_v12  ;;  %v2282_v14 = vpop.f32.mrb[5].mxu1  ;;  %v2356_v12 = vld [vmem:[%s2989_s4 + $0x68] sm:$0xff]  }
 0x1ce   : > { %v485_v15 = vpop.f32.mrb[6].mxu1  ;;  %v590_v18 = vld [vmem:[#allocation2] sm:$0xff]  ;;  %v2358_v14 = vld [vmem:[%s2989_s4 + $0x70] sm:$0xff]  }
 0x1cf   : > { %519 = vst [vmem:[#allocation2 + $0x14] sm:$0xf] %v2162_v13  ;;  %v2163_v16 = vpack.c.bf16 %v485_v15, %v485_v15  ;;  %v2283_v17 = vpop.f32.mrb[7].mxu1  ;;  %v2661_v31 = vld [vmem:[#allocation2] sm:$0xee]  ;;  %v2357_v13 = vld [vmem:[%s2989_s4 + $0x28] sm:$0xff]  }
 0x1d0   : > { %v2654_v20 = vld [vmem:[#allocation2 + $0x8] sm:$0xff]  ;;  %v2359_v15 = vld [vmem:[%s2989_s4 + $0x30] sm:$0xff]   ;;  %v2361_v17 = vld [vmem:[%s2989_s4 + $0x38] sm:$0xff]  }
 0x1d1   : > { %520 = vst [vmem:[#allocation2 + $0x1c] sm:$0xf] %v2163_v16  ;;  %v2657_v21 = vcombine.low %v590_v18, %v2654_v20  ;;  %v1979_v22 = vcombine.high %v590_v18, %v2654_v20  ;;  %v2048_v34 = vcombine.low %v2661_v31, %v2654_v20  ;;  %v2360_v16 = vld [vmem:[%s2989_s4 + $0x78] sm:$0xff]   ;;  %v2362_v18 = vld [vmem:[%s2989_s4 + $0x140] sm:$0xff]  }
 0x1d3   : > { %v697_v23 = vshll.u32 %v1979_v22, 16  ;;  %v685_v26 = vshll.u32 %v2657_v21, 16  ;;  %v695_v39 = vshrl.u32 %v1979_v22, 16  ;;  %v683_v41 = vshrl.u32 %v2657_v21, 16 }
 0x1d4   : > { %v490_v24 = vpop.f32.mrb[8].mxu1  ;;  %v1060_v43 = vrot.slane %v2048_v34, 1  ;;  %v2373_v34 = vld [vmem:[%s2989_s4 + $0x120] sm:$0xff]  }
 0x1d5   : > { %v2164_v27 = vpack.c.bf16 %v490_v24, %v490_v24  ;;  %v2286_v28 = vpop.f32.mrb[9].mxu1  ;;  %v699_v32 = vrot.slane %v697_v23, 1  ;;  %v687_v38 = vrot.slane %v685_v26, 1  ;;  %v2364_v23 = vld [vmem:[%s2989_s4 + $0x148] sm:$0xff]   ;;  %v2366_v26 = vld [vmem:[%s2989_s4 + $0x150] sm:$0xff]  }
 0x1d6   : > { %v493_v29 = vpop.f32.mrb[10].mxu1  ;;  %v2677_v50 = vsel %vm1059_vm12, %v1060_v43, %v1061_v44  ;;  %v2365_v24 = vld [vmem:[%s2989_s4 + $0x108] sm:$0xff]  }
 0x1d7   : > { %521 = vst [vmem:[#allocation2 + $0x24] sm:$0x1] %v2164_v27  ;;  %v2287_v33 = vpop.f32.mrb[11].mxu1  ;;  %v700_v45 = vor.u32 %v699_v32, %v695_v39  ;;  %v688_v47 = vor.u32 %v687_v38, %v683_v41  ;;  %v2049_v27 = vcombine.high %v2661_v31, %v2654_v20  ;;  %v2370_v32 = vld [vmem:[%s2989_s4 + $0x158] sm:$0xff]   ;;  %v2372_v31 = vld [vmem:[%s2989_s4 + $0x160] sm:$0xff]   ;;  %v2376_v38 = vld [vmem:[%s2989_s4 + $0x170] sm:$0xff]  }
 0x1d8   : > { %v2667_v37 = vld [vmem:[#allocation2 + $0x14] ss:$8 sps:$4 sm:$0xff]  }
 0x1d9   : > { %v702_v40 = vshll.u32 %v2667_v37, 16  ;;  %v693_v52 = vsel %vm681_vm13, %v688_v47, %v692_v48  ;;  %v714_v58 = vshrl.u32 %v2667_v37, 16  ;;  %v1064_v28 = vrot.slane %v2667_v37, 1  ;;  %v2371_v20 = vld [vmem:[%s2989_s4 + $0x118] sm:$0xff]   ;;  %v2377_v39 = vld [vmem:[%s2989_s4 + $0x130] sm:$0xff]  }
 0x1da   : > { %v1063_v29 = vrot.slane %v2049_v27, 1  ;;  %v2379_v41 = vld [vmem:[%s2989_s4 + $0x138] sm:$0xff]   ;;  %v2388_v48 = vld [vmem:[%s2991_s6 + $0xa4] ss:$8 sps:$4 sm:$0xff]  }
 0x1db   : > { %v704_v46 = vrot.slane %v702_v40, 1  ;;  %v2378_v40 = vld [vmem:[%s2989_s4 + $0x178] sm:$0xff]  }
 0x1dc   : > { %v1065_v33 = vsel %vm1059_vm12, %v1063_v29, %v1064_v28  ;;  %v2383_v47 = vld [vmem:[%s2991_s6 + $0x90] ss:$8 sps:$4 sm:$0xff]  }
 0x1dd   : > { %v705_v51 = vsel %vm681_vm13, %v700_v45, %v704_v46  ;;  %v716_v0 = vor.u32 %v714_v58, %v704_v46  ;;  %v2380_v45 = vld [vmem:[%s2991_s6 + $0x80] ss:$8 sps:$4 sm:$0xff]   ;;  %v2385_v46 = vld [vmem:[%s2991_s6 + $0x94] ss:$8 sps:$4 sm:$0xff]   ;;  %v2401_v58 = vld [vmem:[%s2991_s6 + $0xf0] ss:$8 sps:$4 sm:$0xff]  }
 0x1de   : > { %v626_v54 = vld [vmem:[#allocation2 + $0x20] sm:$0x11]  ;;  %854 = vmatprep.mubr.bf16.mxu1 %v705_v51  ;;  %v2389_v51 = vld [vmem:[%s2991_s6 + $0xb0] ss:$8 sps:$4 sm:$0xff]  }
 0x1df   : > { %v2684_v55 = vcombine.high %v626_v54, %v626_v54  ;;  %v1982_v56 = vcombine.low %v626_v54, %v626_v54  ;;  %855 = vmatmul.mubr.bf16.vlgmr.msra.gmra.mrb[12].mxu1 %v693_v52  ;;  %v2394_v52 = vld [vmem:[%s2991_s6 + $0xc4] ss:$8 sps:$4 sm:$0xff]   ;;  %v2397_v54 = vld [vmem:[%s2991_s6 + $0xd4] ss:$8 sps:$4 sm:$0xff]  }
 0x1e0   : > { %2207 = vmatpush3.bf16.msra.mxu1 %v2345_v49  ;;  %v2386_v49 = vld [vmem:[%s2991_s6 + $0xa0] ss:$8 sps:$4 sm:$0xff]  }
 0x1e1   : > { %v718_v59 = vshll.u32 %v2684_v55, 16  ;;  %v710_v60 = vshll.u32 %v1982_v56, 16  ;;  %v1066_v61 = vrot.slane %v1982_v56, 1  ;;  %2208 = vmatprep.subr.bf16.mxu1 %v2346_v53  ;;  %v1068_v42 = vrot.slane %v2684_v55, 1  ;;  %v2392_v53 = vld [vmem:[%s2991_s6 + $0xc0] ss:$8 sps:$4 sm:$0xff]  }
 0x1e2   : > { %v2395_v55 = vld [vmem:[%s2991_s6 + $0xd0] ss:$8 sps:$4 sm:$0xff]   ;;  %v2400_v56 = vld [vmem:[%s2991_s6 + $0xe4] ss:$8 sps:$4 sm:$0xff]  }
 0x1e3   : > { %v720_v1 = vrot.slane %v718_v59, 1  ;;  %v712_v2 = vrot.slane %v710_v60, 1  ;;  %v2696_v3 = vsel %vm1059_vm12, %v1061_v44, %v1066_v61  ;;  %v1069_v43 = vsel %vm1059_vm12, %v1064_v28, %v1068_v42  ;;  %v2382_v44 = vld [vmem:[%s2991_s6 + $0x84] ss:$8 sps:$4 sm:$0xff]   ;;  %v2403_v59 = vld [vmem:[%s2991_s6 + $0xf4] ss:$8 sps:$4 sm:$0xff]  }
 0x1e4   : > { %2209 = vmatpush3.bf16.msra.mxu1 %v2347_v57  ;;  %1458 = vmatprep.subr.bf16.mxu0 %v2382_v44  ;;  %v2398_v57 = vld [vmem:[%s2991_s6 + $0xe0] ss:$8 sps:$4 sm:$0xff]   ;;  %v2466_v60 = vmov 0   ;;  %v2406_v61 = vld [vmem:[%s2991_s6 + $0x4] ss:$8 sps:$4 sm:$0xff]  }
 0x1e5   : > { %v721_v4 = vsel %vm681_vm13, %v716_v0, %v720_v1  ;;  %2210 = vmatprep.subr.bf16.mxu1 %v2349_v62  ;;  %v713_v8 = vsel %vm681_vm13, %v708_v5, %v712_v2  ;;  %1459 = vmatpush1.bf16.msra.mxu0 %v2380_v45 }
 0x1e6   : > { %862 = vmatprep.mubr.bf16.mxu1 %v721_v4  ;;  %1460 = vmatprep.subr.bf16.mxu0 %v2385_v46 }
 0x1e7   : > { %863 = vmatmul.mubr.bf16.gmra.mrb[16].mxu1 %v713_v8  ;;  %1490 = vmatprep.mubr.bf16.mxu0 %v2466_v60 }
 0x1e8   : > { %2211 = vmatpush3.bf16.msra.mxu1 %v2351_v6  ;;  %1003 = vmatprep.mubr.bf16.mxu1 %v1979_v22  ;;  %v2363_v22 = vld [vmem:[%s2989_s4 + $0x100] sm:$0xff]  }
 0x1e9   : > { %2212 = vmatprep.subr.bf16.mxu1 %v2352_v7  ;;  %1461 = vmatpush1.bf16.msra.mxu0 %v2383_v47 }
 0x1ea   : > { %1462 = vmatprep.subr.bf16.mxu0 %v2388_v48 }
 0x1ec   : > { %2213 = vmatpush3.bf16.msra.mxu1 %v2353_v9 }
 0x1ed   : > { %2214 = vmatprep.subr.bf16.mxu1 %v2354_v10  ;;  %1463 = vmatpush1.bf16.msra.mxu0 %v2386_v49 }
 0x1f0   : > { %2215 = vmatpush3.bf16.msra.mxu1 %v2355_v11 }
 0x1f1   : > { %2216 = vmatprep.subr.bf16.mxu1 %v2356_v12 }
 0x1f4   : > { %2217 = vmatpush3.bf16.msra.mxu1 %v2357_v13 }
 0x1f5   : > { %2218 = vmatprep.subr.bf16.mxu1 %v2358_v14 }
 0x1f8   : > { %2219 = vmatpush3.bf16.msra.mxu1 %v2359_v15 }
 0x1f9   : > { %2220 = vmatprep.subr.bf16.mxu1 %v2360_v16 }
 0x1fc   : > { %2221 = vmatpush3.bf16.msra.mxu1 %v2361_v17 }
 0x1fd   : > { %2234 = vmatprep.subr.bf16.mxu1 %v2362_v18 }
 0x1ff   : > { %1004 = vmatmul.mubr.bf16.vlgmr.msra.gmra.mrb[20].mxu1 %v2657_v21  ;;  %v2367_v21 = vld [vmem:[%s2989_s4 + $0x110] sm:$0xff]  }
 0x200   : > { %1011 = vmatprep.mubr.bf16.mxu1 %v2667_v37  ;;  %2235 = vmatpush3.bf16.msra.mxu1 %v2363_v22  ;;  %v2375_v37 = vld [vmem:[%s2989_s4 + $0x128] sm:$0xff]  }
 0x201   : > { %2236 = vmatprep.subr.bf16.mxu1 %v2364_v23 }
 0x204   : > { %2237 = vmatpush3.bf16.msra.mxu1 %v2365_v24 }
 0x205   : > { %2238 = vmatprep.subr.bf16.mxu1 %v2366_v26 }
 0x207   : > { %1012 = vmatmul.mubr.bf16.gmra.mrb[24].mxu1 %v2665_v36  ;;  %v2374_v36 = vld [vmem:[%s2989_s4 + $0x168] sm:$0xff]  }
 0x208   : > { %2239 = vmatpush3.bf16.msra.mxu1 %v2367_v21  ;;  %1202 = vmatprep.mubr.bf16.mxu1 %v1065_v33 }
 0x209   : > { %2240 = vmatprep.subr.bf16.mxu1 %v2370_v32 }
 0x20c   : > { %2241 = vmatpush3.bf16.msra.mxu1 %v2371_v20 }
 0x20d   : > { %2242 = vmatprep.subr.bf16.mxu1 %v2372_v31  ;;  %v2066_v31 = vld [vmem:[%s2990_s5] ss:$0 sm:$0xff] }
 0x210   : > { %2243 = vmatpush3.bf16.msra.mxu1 %v2373_v34 }
 0x211   : > { %2244 = vmatprep.subr.bf16.mxu1 %v2374_v36 }
 0x214   : > { %2245 = vmatpush3.bf16.msra.mxu1 %v2375_v37 }
 0x215   : > { %2246 = vmatprep.subr.bf16.mxu1 %v2376_v38 }
 0x218   : > { %2247 = vmatpush3.bf16.msra.mxu1 %v2377_v39 }
 0x219   : > { %2248 = vmatprep.subr.bf16.mxu1 %v2378_v40 }
 0x21c   : > { %2249 = vmatpush3.bf16.msra.mxu1 %v2379_v41 }
 0x21f   : > { %1203 = vmatmul.mubr.bf16.vlgmr.msra.gmra.mrb[28].mxu1 %v2677_v50  ;;  %v2391_v50 = vld [vmem:[%s2991_s6 + $0xb4] ss:$8 sps:$4 sm:$0xff]  }
 0x220   : > { %1210 = vmatprep.mubr.bf16.mxu1 %v1069_v43  ;;  %1464 = vmatprep.subr.bf16.mxu0 %v2391_v50 }
 0x221   : > { %1465 = vmatpush1.bf16.msra.mxu0 %v2389_v51 }
 0x222   : > { %1466 = vmatprep.subr.bf16.mxu0 %v2394_v52 }
 0x225   : > { %1467 = vmatpush1.bf16.msra.mxu0 %v2392_v53 }
 0x226   : > { %1468 = vmatprep.subr.bf16.mxu0 %v2397_v54 }
 0x227   : > { %1211 = vmatmul.mubr.bf16.gmra.mrb[32].mxu1 %v2696_v3 }
 0x229   : > { %1469 = vmatpush1.bf16.msra.mxu0 %v2395_v55 }
 0x22a   : > { %1470 = vmatprep.subr.bf16.mxu0 %v2400_v56 }
 0x22d   : > { %1471 = vmatpush1.bf16.msra.mxu0 %v2398_v57  ;;  %v1290_v57 = vld [vmem:[#allocation3] sm:$0xf] }
 0x22e   : > { %1472 = vmatprep.subr.bf16.mxu0 %v2403_v59 }
 0x231   : > { %1473 = vmatpush1.bf16.msra.mxu0 %v2401_v58 }
 0x232   : > { %1593 = vmatprep.subr.bf16.mxu0 %v2406_v61 }
 0x2b2   : > { %v2194_v62 = vpop.f32.mrb[12].mxu1 }
 0x2b3   : > { %v2195_v63 = vpop.f32.mrb[13].mxu1 }
 0x2b4   : > { %v2196_v0 = vadd.f32 %v2195_v63, %v2194_v62  ;;  %v2197_v1 = vpop.f32.mrb[14].mxu1 }
 0x2b5   : > { %v2198_v2 = vpop.f32.mrb[15].mxu1 }
 0x2b6   : > { %v2199_v3 = vadd.f32 %v2198_v2, %v2197_v1 }
 0x2ba   : > { %v2200_v4 = vpop.f32.mrb[16].mxu1 }
 0x2bb   : > { %v2201_v5 = vpop.f32.mrb[17].mxu1 }
 0x2bc   : > { %v2202_v6 = vadd.f32 %v2201_v5, %v2200_v4  ;;  %v2203_v7 = vpop.f32.mrb[18].mxu1 }
 0x2bd   : > { %v2204_v8 = vpop.f32.mrb[19].mxu1 }
 0x2be   : > { %v2205_v9 = vadd.f32 %v2204_v8, %v2203_v7 }
 0x2d2   : > { %v2222_v10 = vpop.f32.mrb[20].mxu1 }
 0x2d3   : > { %v2223_v11 = vpop.f32.mrb[21].mxu1 }
 0x2d4   : > { %v2224_v12 = vadd.f32 %v2223_v11, %v2222_v10  ;;  %v2225_v13 = vpop.f32.mrb[22].mxu1 }
 0x2d5   : > { %v2226_v14 = vpop.f32.mrb[23].mxu1 }
 0x2d6   : > { %v1006_v15 = vadd.f32 %v2224_v12, %v2196_v0  ;;  %v2227_v16 = vadd.f32 %v2226_v14, %v2225_v13 }
 0x2d8   : > { %v1009_v17 = vadd.f32 %v2227_v16, %v2199_v3 }
 0x2da   : > { %v2228_v18 = vpop.f32.mrb[24].mxu1 }
 0x2db   : > { %v2229_v22 = vpop.f32.mrb[25].mxu1 }
 0x2dc   : > { %v2230_v23 = vadd.f32 %v2229_v22, %v2228_v18  ;;  %v2231_v24 = vpop.f32.mrb[26].mxu1 }
 0x2dd   : > { %v2232_v26 = vpop.f32.mrb[27].mxu1 }
 0x2de   : > { %v1014_v27 = vadd.f32 %v2230_v23, %v2202_v6  ;;  %v2233_v28 = vadd.f32 %v2232_v26, %v2231_v24 }
 0x2e0   : > { %v1017_v21 = vadd.f32 %v2233_v28, %v2205_v9 }
 0x2f2   : > { %v2250_v29 = vpop.f32.mrb[28].mxu1 }
 0x2f3   : > { %v2251_v32 = vpop.f32.mrb[29].mxu1 }
 0x2f4   : > { %v2252_v33 = vadd.f32 %v2251_v32, %v2250_v29  ;;  %v2253_v20 = vpop.f32.mrb[30].mxu1 }
 0x2f5   : > { %v2254_v34 = vpop.f32.mrb[31].mxu1 }
 0x2f6   : > { %v1219_v36 = vadd.f32 %v2252_v33, %v1006_v15  ;;  %v2255_v37 = vadd.f32 %v2254_v34, %v2253_v20 }
 0x2f8   : > { %v1230_v38 = vadd.f32 %v2066_v31, %v1219_v36  ;;  %v1220_v39 = vadd.f32 %v2255_v37, %v1009_v17  ;;  %v1296_v17 = vld [vmem:[#allocation3 + $0x10] sm:$0x1] }
 0x2fa   : > { %v1234_v40 = vmax.f32 %v1230_v38, 0.0  ;;  %v1231_v41 = vadd.f32 %v2066_v31, %v1220_v39  ;;  %v2256_v42 = vpop.f32.mrb[32].mxu1 }
 0x2fb   : > { %v2257_v43 = vpop.f32.mrb[33].mxu1 }
 0x2fc   : > { %v2165_v44 = vpack.c.bf16 %v1234_v40, %v1234_v40  ;;  %v1235_v45 = vmax.f32 %v1231_v41, 0.0  ;;  %v2258_v46 = vadd.f32 %v2257_v43, %v2256_v42  ;;  %v2259_v47 = vpop.f32.mrb[34].mxu1  ;;  %v2404_v41 = vld [vmem:[%s2991_s6] ss:$8 sps:$4 sm:$0xff]  }
 0x2fd   : > { %v2260_v48 = vpop.f32.mrb[35].mxu1 }
 0x2fe   : > { %v1251_v49 = vshrl.u32 %v2165_v44, 16  ;;  %v2166_v50 = vpack.c.bf16 %v1235_v45, %v1235_v45  ;;  %v1221_v51 = vadd.f32 %v2258_v46, %v1014_v27  ;;  %v2261_v52 = vadd.f32 %v2260_v48, %v2259_v47  ;;  %v2409_v45 = vld [vmem:[%s2991_s6 + $0x10] ss:$8 sps:$4 sm:$0xff]   ;;  %v2414_v47 = vld [vmem:[%s2991_s6 + $0x24] ss:$8 sps:$4 sm:$0xff]  }
 0x2ff   : > { %v1254_v54 = vshll.u32 %v2165_v44, 16 }
 0x300   : > { %v1253_v53 = vrot.slane %v1251_v49, 7  ;;  %v1259_v55 = vshrl.u32 %v2166_v50, 16  ;;  %v1232_v56 = vadd.f32 %v2066_v31, %v1221_v51  ;;  %v1222_v58 = vadd.f32 %v2261_v52, %v1017_v21  ;;  %v2412_v51 = vld [vmem:[%s2991_s6 + $0x20] ss:$8 sps:$4 sm:$0xff]  }
 0x301   : > { %v1262_v62 = vshll.u32 %v2166_v50, 16 }
 0x302   : > { %v1256_v59 = vor.u32 %v1254_v54, %v1253_v53  ;;  %v1261_v61 = vrot.slane %v1259_v55, 7  ;;  %v1236_v63 = vmax.f32 %v1232_v56, 0.0  ;;  %v1233_v0 = vadd.f32 %v2066_v31, %v1222_v58  ;;  %v2418_v55 = vld [vmem:[%s2991_s6 + $0x34] ss:$8 sps:$4 sm:$0xff]   ;;  %v2421_v58 = vld [vmem:[%s2991_s6 + $0x44] ss:$8 sps:$4 sm:$0xff]  }
 0x303   : > { %v1257_v1 = vrot.slane %v1253_v53, 4 }
 0x304   : > { %v1291_v2 = vsel %vm2559_vm8, %v1256_v59, %v1290_v57  ;;  %v1264_v3 = vor.u32 %v1262_v62, %v1261_v61  ;;  %v2167_v4 = vpack.c.bf16 %v1236_v63, %v1236_v63  ;;  %v1237_v5 = vmax.f32 %v1233_v0, 0.0  ;;  %v2416_v57 = vld [vmem:[%s2991_s6 + $0x30] ss:$8 sps:$4 sm:$0xff]   ;;  %v2419_v59 = vld [vmem:[%s2991_s6 + $0x40] ss:$8 sps:$4 sm:$0xff]  }
 0x305   : > { %1292 = vst [vmem:[#allocation3] sm:$0xf] %v1291_v2  ;;  %v1266_v12 = vrot.slane %v1261_v61, 4  ;;  %v2424_v61 = vld [vmem:[%s2991_s6 + $0x54] ss:$8 sps:$4 sm:$0xff]  }
 0x306   : > { %v1265_v6 = vsel %vm2553_vm7, %v1257_v1, %v1264_v3  ;;  %v1268_v7 = vshrl.u32 %v2167_v4, 16  ;;  %v2168_v8 = vpack.c.bf16 %v1237_v5, %v1237_v5  ;;  %v1271_v10 = vshll.u32 %v2167_v4, 16  ;;  %v2422_v62 = vld [vmem:[%s2991_s6 + $0x50] ss:$8 sps:$4 sm:$0xff]   ;;  %v2427_v63 = vld [vmem:[%s2991_s6 + $0x64] ss:$8 sps:$4 sm:$0xff]  }
 0x307   : > { %1293 = vst [vmem:[#allocation3 + $0x4] sm:$0xf] %v1265_v6  ;;  %v2425_v0 = vld [vmem:[%s2991_s6 + $0x60] ss:$8 sps:$4 sm:$0xff]   ;;  %v2430_v1 = vld [vmem:[%s2991_s6 + $0x74] ss:$8 sps:$4 sm:$0xff]  }
 0x308   : > { %v1270_v9 = vrot.slane %v1268_v7, 7  ;;  %v1277_v11 = vshrl.u32 %v2168_v8, 16  ;;  %v1280_v15 = vshll.u32 %v2168_v8, 16  ;;  %v2428_v2 = vld [vmem:[%s2991_s6 + $0x70] ss:$8 sps:$4 sm:$0xff]  }
 0x309   : > { %v2433_v3 = vld [vmem:[%s2991_s6 + $0x104] ss:$8 sps:$4 sm:$0xff]   ;;  %v2431_v4 = vld [vmem:[%s2991_s6 + $0x100] ss:$8 sps:$4 sm:$0xff]   ;;  %v2436_v5 = vld [vmem:[%s2991_s6 + $0x114] ss:$8 sps:$4 sm:$0xff]  }
 0x30a   : > { %v1273_v13 = vor.u32 %v1271_v10, %v1270_v9  ;;  %v1279_v14 = vrot.slane %v1277_v11, 7  ;;  %v1275_v22 = vrot.slane %v1270_v9, 4  ;;  %v2434_v6 = vld [vmem:[%s2991_s6 + $0x110] ss:$8 sps:$4 sm:$0xff]   ;;  %v2439_v7 = vld [vmem:[%s2991_s6 + $0x124] ss:$8 sps:$4 sm:$0xff]  }
 0x30b   : > { %v2437_v8 = vld [vmem:[%s2991_s6 + $0x120] ss:$8 sps:$4 sm:$0xff]   ;;  %v2442_v9 = vld [vmem:[%s2991_s6 + $0x134] ss:$8 sps:$4 sm:$0xff]   ;;  %v2440_v10 = vld [vmem:[%s2991_s6 + $0x130] ss:$8 sps:$4 sm:$0xff]  }
 0x30c   : > { %v1299_v16 = vld [vmem:[#allocation3] sm:$0x1]  ;;  %v1274_v25 = vsel %vm2553_vm7, %v1266_v12, %v1273_v13  ;;  %v1282_v23 = vor.u32 %v1280_v15, %v1279_v14  ;;  %v1284_v24 = vrot.slane %v1279_v14, 4  ;;  %v1646_v21 = vld [vmem:[#allocation3] sm:$0xe] }
 0x30d   : > { %v1300_v18 = vsel %vm2565_vm9, 0, %v1299_v16  ;;  %1294 = vst [vmem:[#allocation3 + $0x8] sm:$0xf] %v1274_v25  ;;  %v2445_v11 = vld [vmem:[%s2991_s6 + $0x144] ss:$8 sps:$4 sm:$0xff]  }
 0x30e   : > { %1301 = vst [vmem:[#allocation3] sm:$0x1] %v1300_v18  ;;  %v1283_v26 = vsel %vm2553_vm7, %v1275_v22, %v1282_v23  ;;  %v1297_v27 = vsel %vm2565_vm9, %v1284_v24, %v1296_v17  ;;  %v1306_v28 = vld [vmem:[#allocation3 + $0x4] sm:$0xf]  ;;  %v2443_v12 = vld [vmem:[%s2991_s6 + $0x140] ss:$8 sps:$4 sm:$0xff]   ;;  %v1817_v18 = vlaneseq }
 0x30f   : > { %1295 = vst [vmem:[#allocation3 + $0xc] sm:$0xf] %v1283_v26  ;;  %1298 = vst [vmem:[#allocation3 + $0x10] sm:$0x1] %v1297_v27  ;;  %v2138_v32 = vcombine.low %v1646_v21, %v1306_v28  ;;  %v2448_v13 = vld [vmem:[%s2991_s6 + $0x154] ss:$8 sps:$4 sm:$0xff]  }
 0x310   : > { %v2446_v14 = vld [vmem:[%s2991_s6 + $0x150] ss:$8 sps:$4 sm:$0xff]   ;;  %v2451_v15 = vld [vmem:[%s2991_s6 + $0x164] ss:$8 sps:$4 sm:$0xff]   ;;  %v2449_v16 = vld [vmem:[%s2991_s6 + $0x160] ss:$8 sps:$4 sm:$0xff]  }
 0x311   : > { %v1667_v37 = vrot.slane %v2138_v32, 1  ;;  %v2454_v25 = vld [vmem:[%s2991_s6 + $0x174] ss:$8 sps:$4 sm:$0xff]   ;;  %v2452_v17 = vld [vmem:[%s2991_s6 + $0x170] ss:$8 sps:$4 sm:$0xff]   ;;  %v1818_v22 = vshrl.u32 %v1817_v18, 7 }
 0x312   : > { %v1815_v24 = vld [vmem:[%s2992_s7] sm:$0x3] }
 0x313   : > { %v1819_v23 = vsub.s32 0, %v1818_v22  ;;  %v1823_v26 = vsub.s32 1, %v1818_v22 }
 0x315   : > { %v1305_v29 = vld [vmem:[#allocation3] sm:$0xf]  ;;  %v1820_v27 = vrot.slane %v1815_v24, %v1819_v23 }
 0x316   : > { %v2087_v33 = vcombine.low %v1305_v29, %v1306_v28  ;;  %v1302_v20 = vld [vmem:[#allocation3 + $0x10] sm:$0x1]  ;;  %v2859_v31 = vld [vmem:[#allocation3 + $0x8] sm:$0xff]   ;;  %v1824_v28 = vrot.slane %v1815_v24, %v1823_v26 }
 0x317   : > { %v1303_v34 = vsel %vm2571_vm10, 0, %v1302_v20  ;;  %v1364_v19 = vshll.u32 %v2859_v31, 16  ;;  %v1668_v30 = vrot.slane %v2859_v31, 1  ;;  %v1368_v48 = vshrl.u32 %v2859_v31, 16 }
 0x318   : > { %v1359_v36 = vshll.u32 %v2087_v33, 16  ;;  %1304 = vst [vmem:[#allocation3 + $0x10] sm:$0x1] %v1303_v34  ;;  %v1357_v38 = vshrl.u32 %v2087_v33, 16 }
 0x319   : > { %v2866_v40 = vsel %vm1059_vm12, %v1667_v37, %v1668_v30  ;;  %v1366_v43 = vrot.slane %v1364_v19, 1 }
 0x31a   : > { %v1361_v39 = vrot.slane %v1359_v36, 1 }
 0x31b   : > { %v1370_v52 = vor.u32 %v1368_v48, %v1366_v43 }
 0x31c   : > { %v1362_v42 = vor.u32 %v1361_v39, %v1357_v38 }
 0x31e   : > { %v1367_v44 = vsel %vm681_vm13, %v1362_v42, %v1366_v43 }
 0x31f   : > { %1491 = vmatmul.mubr.bf16.vlgmr.msra.gmra.mrb[4].mxu0 %v1367_v44  ;;  %v2415_v46 = vld [vmem:[#allocation3 + $0x10] ss:$0 sps:$4 sm:$0x11]  }
 0x320   : > { %1594 = vmatpush1.bf16.msra.mxu0 %v2404_v41  ;;  %1500 = vmatprep.mubr.bf16.mxu0 %v2466_v60  ;;  %v1372_v49 = vshll.u32 %v2415_v46, 16  ;;  %v1670_v50 = vrot.slane %v2415_v46, 1 }
 0x321   : > { %1595 = vmatprep.subr.bf16.mxu0 %v2411_v35 }
 0x322   : > { %v1374_v53 = vrot.slane %v1372_v49, 1  ;;  %v2887_v54 = vsel %vm1059_vm12, %v1668_v30, %v1670_v50 }
 0x324   : > { %1596 = vmatpush1.bf16.msra.mxu0 %v2409_v45  ;;  %v1375_v56 = vsel %vm681_vm13, %v1370_v52, %v1374_v53 }
 0x325   : > { %1597 = vmatprep.subr.bf16.mxu0 %v2414_v47 }
 0x327   : > { %1501 = vmatmul.mubr.bf16.gmra.mrb[8].mxu0 %v1375_v56 }
 0x328   : > { %1598 = vmatpush1.bf16.msra.mxu0 %v2412_v51  ;;  %1625 = vmatprep.mubr.bf16.mxu0 %v2466_v60 }
 0x329   : > { %1599 = vmatprep.subr.bf16.mxu0 %v2418_v55 }
 0x32c   : > { %1600 = vmatpush1.bf16.msra.mxu0 %v2416_v57 }
 0x32d   : > { %1601 = vmatprep.subr.bf16.mxu0 %v2421_v58 }
 0x330   : > { %1602 = vmatpush1.bf16.msra.mxu0 %v2419_v59 }
 0x331   : > { %1603 = vmatprep.subr.bf16.mxu0 %v2424_v61 }
 0x334   : > { %1604 = vmatpush1.bf16.msra.mxu0 %v2422_v62 }
 0x335   : > { %1605 = vmatprep.subr.bf16.mxu0 %v2427_v63 }
 0x338   : > { %1606 = vmatpush1.bf16.msra.mxu0 %v2425_v0 }
 0x339   : > { %1607 = vmatprep.subr.bf16.mxu0 %v2430_v1 }
 0x33c   : > { %1608 = vmatpush1.bf16.msra.mxu0 %v2428_v2 }
 0x33d   : > { %1754 = vmatprep.subr.bf16.mxu0 %v2433_v3 }
 0x33f   : > { %1626 = vmatmul.mubr.bf16.vlgmr.msra.gmra.mrb[4].mxu0 %v2087_v33 }
 0x340   : > { %1755 = vmatpush1.bf16.msra.mxu0 %v2431_v4  ;;  %1635 = vmatprep.mubr.bf16.mxu0 %v2466_v60 }
 0x341   : > { %1756 = vmatprep.subr.bf16.mxu0 %v2436_v5 }
 0x344   : > { %1757 = vmatpush1.bf16.msra.mxu0 %v2434_v6 }
 0x345   : > { %1758 = vmatprep.subr.bf16.mxu0 %v2439_v7 }
 0x347   : > { %1636 = vmatmul.mubr.bf16.gmra.mrb[8].mxu0 %v2859_v31 }
 0x348   : > { %1759 = vmatpush1.bf16.msra.mxu0 %v2437_v8  ;;  %1786 = vmatprep.mubr.bf16.mxu0 %v2466_v60 }
 0x349   : > { %1760 = vmatprep.subr.bf16.mxu0 %v2442_v9 }
 0x34c   : > { %1761 = vmatpush1.bf16.msra.mxu0 %v2440_v10 }
 0x34d   : > { %1762 = vmatprep.subr.bf16.mxu0 %v2445_v11 }
 0x350   : > { %1763 = vmatpush1.bf16.msra.mxu0 %v2443_v12 }
 0x351   : > { %1764 = vmatprep.subr.bf16.mxu0 %v2448_v13 }
 0x354   : > { %1765 = vmatpush1.bf16.msra.mxu0 %v2446_v14 }
 0x355   : > { %1766 = vmatprep.subr.bf16.mxu0 %v2451_v15 }
 0x358   : > { %1767 = vmatpush1.bf16.msra.mxu0 %v2449_v16 }
 0x359   : > { %1768 = vmatprep.subr.bf16.mxu0 %v2454_v25 }
 0x35c   : > { %1769 = vmatpush1.bf16.msra.mxu0 %v2452_v17 }
 0x35f   : > { %1787 = vmatmul.mubr.bf16.vlgmr.msra.gmra.mrb[4].mxu0 %v2866_v40 }
 0x360   : > { %1796 = vmatprep.mubr.bf16.mxu0 %v2466_v60 }
 0x367   : > { %1797 = vmatmul.mubr.bf16.gmra.mrb[8].mxu0 %v2887_v54 }
 0x432   : > { %v1788_v21 = vpop.f32.mrb[4].mxu0 }
 0x433   : > { %v1827_v29 = vadd.f32 %v1820_v27, %v1788_v21  ;;  %v1790_v32 = vpop.f32.mrb[5].mxu0 }
 0x434   : > { %v1828_v60 = vadd.f32 %v1824_v28, %v1790_v32  ;;  %v1792_v33 = vpop.f32.mrb[6].mxu0 }
 0x435   : > { %v1835_v20 = vmax.f32 %v1827_v29, 0.0  ;;  %v1829_v31 = vadd.f32 %v1820_v27, %v1792_v33  ;;  %v1794_v34 = vpop.f32.mrb[7].mxu0 }
 0x436   : > { %v1836_v36 = vmax.f32 %v1828_v60, 0.0  ;;  %v1830_v19 = vadd.f32 %v1824_v28, %v1794_v34 }
 0x437   : > { %1843 = vst [vmem:[%s325_s30] sm:$0xff] %v1835_v20  ;;  %v1837_v37 = vmax.f32 %v1829_v31, 0.0 }
 0x438   : > { %1844 = vst [vmem:[%s325_s30 + $0x8] sm:$0xff] %v1836_v36  ;;  %v1838_v30 = vmax.f32 %v1830_v19, 0.0 }
 0x439   : > { %1845 = vst [vmem:[%s325_s30 + $0x10] sm:$0xff] %v1837_v37 }
 0x43a   : > { %1846 = vst [vmem:[%s325_s30 + $0x18] sm:$0xff] %v1838_v30  ;;  %v1798_v38 = vpop.f32.mrb[8].mxu0 }
 0x43b   : > { %v1831_v39 = vadd.f32 %v1820_v27, %v1798_v38  ;;  %v1800_v40 = vpop.f32.mrb[9].mxu0 }
 0x43c   : > { %v1832_v41 = vadd.f32 %v1824_v28, %v1800_v40  ;;  %v1802_v42 = vpop.f32.mrb[10].mxu0 }
 0x43d   : > { %v1839_v43 = vmax.f32 %v1831_v39, 0.0  ;;  %v1833_v35 = vadd.f32 %v1820_v27, %v1802_v42  ;;  %v1804_v44 = vpop.f32.mrb[11].mxu0 }
 0x43e   : > { %v1840_v45 = vmax.f32 %v1832_v41, 0.0  ;;  %v1834_v46 = vadd.f32 %v1824_v28, %v1804_v44 }
 0x43f   : > { %1847 = vst [vmem:[%s325_s30 + $0x20] sm:$0xff] %v1839_v43  ;;  %v1841_v47 = vmax.f32 %v1833_v35, 0.0 }
 0x440   : > { %1848 = vst [vmem:[%s325_s30 + $0x28] sm:$0xff] %v1840_v45  ;;  %v1842_v48 = vmax.f32 %v1834_v46, 0.0 }
 0x441   : > { %1849 = vst [vmem:[%s325_s30 + $0x30] sm:$0xff] %v1841_v47 }
 0x442   : > { %1850 = vst [vmem:[%s325_s30 + $0x38] sm:$0xff] %v1842_v48 }
 0x443 PF: > { %s18_s27 = sadd.s32 1, %s2462_s27  }
 0x444   : > { %p15_p4 = scmp.ge.s32.totalorder %s18_s27, 4  }
 0x446   :  { %17 = sbr.rel (!%p15_p4) target bundleno = 1 (0x1), region = 89 }

</bundles_post_ra>
